<compile_context>
chip_gen: v7x
topology: tpu7x:2x2x1
jax: 0.10.0
libtpu: 0.0.40
codegen_flags: <defaults>
</compile_context>

<pallas_src>
import functools

import jax
import jax.numpy as jnp
from jax.experimental import pallas as pl
from jax.experimental.pallas import tpu as pltpu


def _gemm_pool_relu_kernel(p_ref, w_ref, b_ref, o_ref, *, td, H, W):
    """One (batch, depth-chunk) grid step.

    p_ref: (1, td*H*W, K_pad)    im2col patches (lanes = padded contraction)
    w_ref: (K_pad, CO_pad)       flattened conv weights (zero-padded)
    b_ref: (1, CO_pad)           bias (zero in padded channels)
    o_ref: (1, (td//2)*(H//2)*(W//2), CO_pad)  pooled + ReLU'd output
    """
    co = o_ref.shape[-1]

    # Conv3d as a single MXU matmul: contraction = k^3*Cin padded to 128.
    y = jnp.dot(p_ref[0], w_ref[...], preferred_element_type=jnp.float32)
    y = y + b_ref[...]                                   # (td*H*W, CO_pad)

    # MaxPool3d((2,2,2), stride (2,2,2)) fused as elementwise maxima (VPU);
    # channels stay on the dense 128-wide lane axis throughout.
    y = y.reshape(td, H, W // 2, 2, co)
    y = jnp.maximum(y[:, :, :, 0, :], y[:, :, :, 1, :])  # pool over W
    y = y.reshape(td, H // 2, 2, W // 2, co)
    y = jnp.maximum(y[:, :, 0, :, :], y[:, :, 1, :, :])  # pool over H
    y = y.reshape(td // 2, 2, H // 2, W // 2, co)
    y = jnp.maximum(y[:, 0], y[:, 1])                    # pool over D

    # ReLU
    y = jnp.maximum(y, 0.0)

    # Lane-dense store: sublanes = pooled voxels, lanes = padded channels.
    o_ref[0] = y.reshape((td // 2) * (H // 2) * (W // 2), co).astype(o_ref.dtype)


def _round_up(x, m):
    return (x + m - 1) // m * m


def _choose_block_d(D, H, W, k_pad, co_pad, bytes_per_elem=4,
                    budget_bytes=8 * 1024 * 1024):
    """Largest even divisor of D whose per-step in/out blocks fit the budget."""
    best = 2
    for td in range(2, D + 1, 2):
        if D % td:
            continue
        in_bytes = td * H * W * k_pad * bytes_per_elem
        out_bytes = (td // 2) * (H // 2) * (W // 2) * co_pad * bytes_per_elem
        if in_bytes + out_bytes <= budget_bytes:
            best = td
    return best


def conv_pool_relu(x_ncdhw, weight, bias, kernel_size, *, use_bf16=False,
                   block_d=None):
    """x_ncdhw: (N, Cin, D, H, W) float32
       weight : (Cout, Cin, k, k, k) float32   (PyTorch Conv3d layout)
       bias   : (Cout,) float32
       returns (N, Cout, D//2, H//2, W//2) float32 (NCDHW, like PyTorch)."""
    k = int(kernel_size)
    assert k % 2 == 1, "only odd kernel_size supported (padding = k // 2)"
    pad = k // 2
    N, Cin, D, H, W = x_ncdhw.shape
    Cout = weight.shape[0]
    assert D % 2 == 0 and H % 2 == 0 and W % 2 == 0, "spatial dims must be even"

    kdim = k * k * k * Cin
    K_pad = _round_up(kdim, 128)
    CO_pad = _round_up(Cout, 128)

    # ---- wrapper glue: channels-last, SAME pad, one im2col gather pass ----
    x = jnp.transpose(x_ncdhw, (0, 2, 3, 4, 1))              # (N, D, H, W, Cin)
    xp = jnp.pad(x, ((0, 0), (pad, pad), (pad, pad), (pad, pad), (0, 0)))
    # TODO(synk): for very large volumes, gather these taps per depth-chunk
    # inside the kernel (manual DMA) to avoid the k^3x HBM inflation of im2col.
    taps = []
    for kd in range(k):
        for kh in range(k):
            for kw in range(k):
                taps.append(xp[:, kd:kd + D, kh:kh + H, kw:kw + W, :])
    patches = jnp.concatenate(taps, axis=-1)                 # (N,D,H,W,k^3*Cin)
    if K_pad != kdim:
        patches = jnp.pad(patches, ((0, 0),) * 4 + ((0, K_pad - kdim),))
    patches = patches.reshape(N, D * H * W, K_pad)

    # Weights -> dense 2-D (K_pad, CO_pad) tile; bias -> (1, CO_pad).
    w2 = jnp.transpose(weight, (2, 3, 4, 1, 0)).reshape(kdim, Cout)
    w2 = jnp.pad(w2, ((0, K_pad - kdim), (0, CO_pad - Cout)))
    b2 = jnp.pad(bias, (0, CO_pad - Cout)).reshape(1, CO_pad)

    if use_bf16:
        # v6e/v7x MXUs are native bf16; accumulation stays f32 inside the kernel.
        patches = patches.astype(jnp.bfloat16)
        w2 = w2.astype(jnp.bfloat16)

    # ---- tiling: grid over (batch, depth chunks); both axes parallel ----
    td = block_d if block_d is not None else _choose_block_d(D, H, W, K_pad, CO_pad)
    assert D % td == 0 and td % 2 == 0
    m_in = td * H * W
    m_out = (td // 2) * (H // 2) * (W // 2)
    grid = (N, D // td)

    in_bytes = m_in * K_pad * patches.dtype.itemsize
    out_bytes = m_out * CO_pad * 4
    w_bytes = (K_pad * CO_pad) * w2.dtype.itemsize + CO_pad * 4
    vmem_limit = int(min(max(32 * 1024 * 1024,
                             2 * (in_bytes + out_bytes) + 2 * w_bytes + (4 << 20)),
                         48 * 1024 * 1024))

    cost = pl.CostEstimate(
        flops=2 * N * D * H * W * K_pad * CO_pad,
        transcendentals=0,
        bytes_accessed=(patches.size * patches.dtype.itemsize
                        + w2.size * w2.dtype.itemsize
                        + b2.size * 4
                        + N * m_out * (D // td) * CO_pad * 4))

    kernel = functools.partial(_gemm_pool_relu_kernel, td=td, H=H, W=W)

    out = pl.pallas_call(
        kernel,
        out_shape=jax.ShapeDtypeStruct(
            (N, (D // 2) * (H // 2) * (W // 2), CO_pad), x_ncdhw.dtype),
        grid_spec=pltpu.PrefetchScalarGridSpec(
            num_scalar_prefetch=0,
            grid=grid,
            in_specs=[
                pl.BlockSpec((1, m_in, K_pad), lambda n, c: (n, c, 0)),
                pl.BlockSpec((K_pad, CO_pad), lambda n, c: (0, 0)),
                pl.BlockSpec((1, CO_pad), lambda n, c: (0, 0)),
            ],
            out_specs=pl.BlockSpec((1, m_out, CO_pad), lambda n, c: (n, c, 0)),
        ),
        compiler_params=pltpu.CompilerParams(
            dimension_semantics=("parallel", "parallel"),
            vmem_limit_bytes=vmem_limit),
        cost_estimate=cost,
    )(patches, w2, b2)

    # drop the channel padding, back to NCDHW
    out = out.reshape(N, D // 2, H // 2, W // 2, CO_pad)[..., :Cout]
    return jnp.transpose(out, (0, 4, 1, 2, 3))


def reference(x_ncdhw, weight, bias, kernel_size):
    """Pure-JAX reference (lax conv + pool) to sanity-check the kernel."""
    pad = kernel_size // 2
    y = jax.lax.conv_general_dilated(
        x_ncdhw, weight, window_strides=(1, 1, 1),
        padding=[(pad, pad)] * 3,
        dimension_numbers=("NCDHW", "OIDHW", "NCDHW"))
    y = y + bias.reshape(1, -1, 1, 1, 1)
    y = jax.lax.reduce_window(
        y, -jnp.inf, jax.lax.max,
        window_dimensions=(1, 1, 2, 2, 2),
        window_strides=(1, 1, 2, 2, 2),
        padding="VALID")
    return jnp.maximum(y, 0.0)


if __name__ == "__main__":
    key = jax.random.PRNGKey(0)
    k_x, k_w, k_b = jax.random.split(key, 3)

    N, Cin, Cout, D, H, W, K = 2, 4, 8, 8, 8, 8, 3

    x = jax.random.normal(k_x, (N, Cin, D, H, W), dtype=jnp.float32)
    # Deterministic synthetic params (PyTorch-style uniform fan-in init).
    fan_in = Cin * K * K * K
    bound = 1.0 / jnp.sqrt(fan_in)
    weight = jax.random.uniform(k_w, (Cout, Cin, K, K, K),
                                minval=-bound, maxval=bound, dtype=jnp.float32)
    bias = jax.random.uniform(k_b, (Cout,), minval=-bound, maxval=bound,
                              dtype=jnp.float32)

    out = conv_pool_relu(x, weight, bias, K)
    out = jax.block_until_ready(out)

    ref = jax.block_until_ready(reference(x, weight, bias, K))
    assert out.shape == (N, Cout, D // 2, H // 2, W // 2), out.shape
    assert jnp.allclose(out, ref, atol=1e-4, rtol=1e-4), \
        float(jnp.max(jnp.abs(out - ref)))

    print("KERNEL_OK")
</pallas_src>

<mosaic_0001>
module attributes {stable_mosaic.version = 11 : i64} {
  func.func @_gemm_pool_relu_kernel(%arg0: i32, %arg1: i32, %arg2: memref<1x512x128xf32, #tpu.memory_space<vmem>>, %arg3: memref<128x128xf32, #tpu.memory_space<vmem>>, %arg4: memref<1x128xf32, #tpu.memory_space<vmem>>, %arg5: memref<1x64x128xf32, #tpu.memory_space<vmem>>) attributes {dimension_semantics = [#tpu.dimension_semantics<parallel>, #tpu.dimension_semantics<parallel>], iteration_bounds = array<i64: 2, 1>, scalar_prefetch = 0 : i64, scratch_operands = 0 : i64, tpu.core_type = #tpu.core_type<tc>, window_params = [{transform_indices = @transform_0, window_bounds = array<i64: 1, 512, 128>}, {pipeline_mode = #tpu.pipeline_mode<synchronous>, transform_indices = @transform_1, window_bounds = array<i64: 128, 128>}, {pipeline_mode = #tpu.pipeline_mode<synchronous>, transform_indices = @transform_2, window_bounds = array<i64: 1, 128>}, {transform_indices = @transform_3, window_bounds = array<i64: 1, 64, 128>}]} {
    %c0 = arith.constant 0 : index
    %c0_0 = arith.constant 0 : index
    %c0_1 = arith.constant 0 : index
    %0 = vector.load %arg2[%c0, %c0_0, %c0_1] : memref<1x512x128xf32, #tpu.memory_space<vmem>>, vector<1x512x128xf32>
    %1 = vector.shape_cast %0 : vector<1x512x128xf32> to vector<512x128xf32>
    %c0_2 = arith.constant 0 : index
    %c0_3 = arith.constant 0 : index
    %2 = vector.load %arg3[%c0_2, %c0_3] : memref<128x128xf32, #tpu.memory_space<vmem>>, vector<128x128xf32>
    %cst = arith.constant dense<0.000000e+00> : vector<512x128xf32>
    %3 = tpu.matmul %1, %2, %cst {dimension_numbers = #tpu.dot_dimension_numbers<[1], [0], [0], [1], [0, 0, 1, 1], [], []>} : vector<512x128xf32>, vector<128x128xf32>, vector<512x128xf32> -> vector<512x128xf32>
    %c0_4 = arith.constant 0 : index
    %c0_5 = arith.constant 0 : index
    %4 = vector.load %arg4[%c0_4, %c0_5] : memref<1x128xf32, #tpu.memory_space<vmem>>, vector<1x128xf32>
    %5 = vector.broadcast %4 : vector<1x128xf32> to vector<512x128xf32>
    %6 = arith.addf %3, %5 : vector<512x128xf32>
    %7 = vector.shape_cast %6 : vector<512x128xf32> to vector<8x8x4x2x128xf32>
    %8 = vector.extract_strided_slice %7 {offsets = [0, 0, 0, 0, 0], sizes = [8, 8, 4, 1, 128], strides = [1, 1, 1, 1, 1]} : vector<8x8x4x2x128xf32> to vector<8x8x4x1x128xf32>
    %9 = vector.shape_cast %8 : vector<8x8x4x1x128xf32> to vector<8x8x4x128xf32>
    %10 = vector.extract_strided_slice %7 {offsets = [0, 0, 0, 1, 0], sizes = [8, 8, 4, 1, 128], strides = [1, 1, 1, 1, 1]} : vector<8x8x4x2x128xf32> to vector<8x8x4x1x128xf32>
    %11 = vector.shape_cast %10 : vector<8x8x4x1x128xf32> to vector<8x8x4x128xf32>
    %12 = arith.maximumf %9, %11 : vector<8x8x4x128xf32>
    %13 = vector.shape_cast %12 : vector<8x8x4x128xf32> to vector<8x4x2x4x128xf32>
    %14 = vector.extract_strided_slice %13 {offsets = [0, 0, 0, 0, 0], sizes = [8, 4, 1, 4, 128], strides = [1, 1, 1, 1, 1]} : vector<8x4x2x4x128xf32> to vector<8x4x1x4x128xf32>
    %15 = vector.shape_cast %14 : vector<8x4x1x4x128xf32> to vector<8x4x4x128xf32>
    %16 = vector.extract_strided_slice %13 {offsets = [0, 0, 1, 0, 0], sizes = [8, 4, 1, 4, 128], strides = [1, 1, 1, 1, 1]} : vector<8x4x2x4x128xf32> to vector<8x4x1x4x128xf32>
    %17 = vector.shape_cast %16 : vector<8x4x1x4x128xf32> to vector<8x4x4x128xf32>
    %18 = arith.maximumf %15, %17 : vector<8x4x4x128xf32>
    %19 = vector.shape_cast %18 : vector<8x4x4x128xf32> to vector<4x2x4x4x128xf32>
    %20 = vector.extract_strided_slice %19 {offsets = [0, 0, 0, 0, 0], sizes = [4, 1, 4, 4, 128], strides = [1, 1, 1, 1, 1]} : vector<4x2x4x4x128xf32> to vector<4x1x4x4x128xf32>
    %21 = vector.shape_cast %20 : vector<4x1x4x4x128xf32> to vector<4x4x4x128xf32>
    %22 = vector.extract_strided_slice %19 {offsets = [0, 1, 0, 0, 0], sizes = [4, 1, 4, 4, 128], strides = [1, 1, 1, 1, 1]} : vector<4x2x4x4x128xf32> to vector<4x1x4x4x128xf32>
    %23 = vector.shape_cast %22 : vector<4x1x4x4x128xf32> to vector<4x4x4x128xf32>
    %24 = arith.maximumf %21, %23 : vector<4x4x4x128xf32>
    %cst_6 = arith.constant 0.000000e+00 : f32
    %25 = vector.broadcast %cst_6 : f32 to vector<4x4x4x128xf32>
    %26 = arith.maximumf %24, %25 : vector<4x4x4x128xf32>
    %27 = vector.shape_cast %26 : vector<4x4x4x128xf32> to vector<64x128xf32>
    %c0_7 = arith.constant 0 : index
    %c0_8 = arith.constant 0 : index
    %c0_9 = arith.constant 0 : index
    %28 = vector.load %arg5[%c0_7, %c0_8, %c0_9] : memref<1x64x128xf32, #tpu.memory_space<vmem>>, vector<1x64x128xf32>
    %29 = vector.shape_cast %28 : vector<1x64x128xf32> to vector<64x128xf32>
    %30 = vector.shape_cast %27 : vector<64x128xf32> to vector<1x64x128xf32>
    tpu.vector_store %arg5[%c0_7, %c0_8, %c0_9], %30 {strides = array<i32>} : memref<1x64x128xf32, #tpu.memory_space<vmem>>, vector<1x64x128xf32>,
    return
  }
  func.func @transform_0(%arg0: i32, %arg1: i32) -> (i32, i32, i32) {
    %c0_i32 = arith.constant 0 : i32
    %c0_i32_0 = arith.constant 0 : i32
    return %arg0, %arg1, %c0_i32 : i32, i32, i32
  }
  func.func @transform_1(%arg0: i32, %arg1: i32) -> (i32, i32) {
    %c0_i32 = arith.constant 0 : i32
    %c0_i32_0 = arith.constant 0 : i32
    %c0_i32_1 = arith.constant 0 : i32
    return %c0_i32, %c0_i32_0 : i32, i32
  }
  func.func @transform_2(%arg0: i32, %arg1: i32) -> (i32, i32) {
    %c0_i32 = arith.constant 0 : i32
    %c0_i32_0 = arith.constant 0 : i32
    %c0_i32_1 = arith.constant 0 : i32
    return %c0_i32, %c0_i32_0 : i32, i32
  }
  func.func @transform_3(%arg0: i32, %arg1: i32) -> (i32, i32, i32) {
    %c0_i32 = arith.constant 0 : i32
    %c0_i32_0 = arith.constant 0 : i32
    return %arg0, %arg1, %c0_i32 : i32, i32, i32
  }
}

</mosaic_0001>

<bundles_post_ra>
// kernel: tpu_custom_call.1
= control target key start
LH: loop header
LB: loop body
LE: loop exit
PB: predicated region body
PF: predicated region fallthrough
CT: control target
= control target key end

     0   :  { %8 = vsyncpa [#allocation3], 0  ;;  %s6113_s0 = inlined_call_operand.hbm [shape: f32[2,512,128], index: 0, kind: input, shape index: {}]   ;;  %s6114_s1 = inlined_call_operand.hbm [shape: f32[128,128], index: 1, kind: input, shape index: {}]   ;;  %s6115_s2 = inlined_call_operand.vmem [shape: f32[1,128], index: 2, kind: input, shape index: {}]   ;;  %s6116_s3 = inlined_call_operand.hbm [shape: f32[2,64,128], index: 3, kind: output, shape index: {}]  }
   0x1   :  { %10 = vsyncpa [#allocation3 + $0x1], 0 }
   0x2   :  { %11 = vsyncpa [#allocation6], 0 }
   0x3   :  { %12 = vsyncpa [#allocation4], 0 }
   0x4   :  { %14 = vsyncpa [#allocation4 + $0x1], 0  ;;  %s4682_s12 = smov 0   ;;  %s4684_s13 = smov 0  }
   0x5   :  { %s4686_s14 = smov 0   ;;  %s4688_s15 = smov 0  }
   0x6   :  { %s4690_s16 = smov 0   ;;  %s4692_s17 = smov 0  }
   0x7 LB: > { %s3896_s18 = sadd.s32 4294967295, %s4652_s17   ;;  %s3897_s19 = sadd.s32 4294967294, %s4652_s17   ;;  %s4652_s17 = sphi %s4692_s17, %s20_s17   ;;  %s4648_s16 = sphi %s4690_s16, %s6515_s16   ;;  %s4644_s15 = sphi %s4688_s15, %s6514_s15   ;;  %s4640_s14 = sphi %s4686_s14, %s6513_s14   ;;  %s4636_s13 = sphi %s4684_s13, %s6512_s13   ;;  %s4632_s12 = sphi %s4682_s12, %s6511_s12  }
   0x8   : > { %p54_p0 = scmp.ne.s32.totalorder %s4636_s13, %s4632_s12  ;;  %p4716_p1 = scmp.eq.s32.totalorder %s3896_s18, 0 }
   0x9   : > { %p4720_p2 = scmp.eq.s32.totalorder %s3896_s18, 1  ;;  %p128_p3 = scmp.eq.s32.totalorder %s3897_s19, 1 }
   0xa   : > { %s6206_s20 = scalar_select %p4716_p1, 1, 0 }
   0xb   : > { %s6207_s21 = scalar_select %p4720_p2, 1, 0 }
   0xc   : > { %p4726_p4 = por %p4716_p1, %p54_p0  ;;  %p3898_p5 = scmp.ge.s32.totalorder %s4652_s17, 1 }
   0xd   : > { %p4731_p6 = por %p128_p3, %p54_p0  ;;  %p135_p7 = scmp.lt.s32.totalorder %s4652_s17, 3 }
   0xe   : > { %s6208_s22 = scalar_select %p4726_p4, 1, 0 }
   0xf   : > { %s6209_s23 = scalar_select %p4731_p6, 1, 0 }
  0x10   : > { %p4736_p8 = pnand %p3898_p5, %p135_p7  ;;  %s4654_s25 = smov [#allocation5]  }
  0x11   : > { %s147_s26 = sshll.u32 %s4654_s25, 4  ;;  %s32_s28 = sadd.s32 1, %s4648_s16  ;;  %s148_s26 = int_to_ptr.vmem [resolvable:$true] %s147_s26 }
  0x12   : > { %s6210_s24 = scalar_select %p4736_p8, 1, 0 }
  0x13   : > { %p4436_p9 = pneg %p4736_p8  ;;  %s4508_s4 = scalar_lea.hbm %s6114_s1, 2048 }
  0x14   : > { %p4509_p12 = scmp.ne.s32.totalorder %s6114_s1, %s4508_s4  ;;  %p4515_p5 = scmp.lt.u32.totalorder %s4508_s4, %s6114_s1 }
  0x15   : > { %p4745_p11 = pnand %p4436_p9, %p4716_p1 }
  0x17   : > { %p4510_p13 = pneg %p4745_p11 }
  0x19   : > { %p4511_p0 = pnand %p4510_p13, %p4509_p12 }
  0x1b   : > { %p4512_p3 = pneg %p4511_p0 }
  0x1d   : > { %p4517_p7 = pnand %p4515_p5, %p4512_p3 }
  0x1f   : > { %4520 = shalt.err (!%p4517_p7)
}
  0x20   : > { %s4521_s9 = scalar_lea.vmem %s148_s26, 2048  ;;  %p4529_p1 = scmp.lt.s32.totalorder %s148_s26, %s148_s26 }
  0x21   : > { %p4522_p9 = scmp.ne.s32.totalorder %s148_s26, %s4521_s9  ;;  %p4530_p4 = scmp.lt.s32.totalorder %s4521_s9, %s4521_s9 }
  0x23   : > { %p4524_p10 = pnand %p4522_p9, %p4510_p13  ;;  %p4531_p8 = por %p4530_p4, %p4529_p1 }
  0x25   : > { %p4525_p6 = pneg %p4524_p10 }
  0x27   : > { %p4532_p2 = pnand %p4531_p8, %p4525_p6 }
  0x29   : > { %4535 = shalt.err (!%p4532_p2)
}
  0x2a   : > { %s4655_s10 = smov 128   ;;  %s4656_s11 = smov 8  }
  0x2b   : > { %4439 = dma.hbm_to_vmem [thread:$0]  (!%p4745_p11), %s6114_s1, 2048, %s148_s26, [#allocation6], %s4655_s10, %s4655_s10, %s4656_s11  }
  0x2c   : > { %p34_p1 = scmp.ge.s32.totalorder %s32_s28, 2  ;;  %s41_s25 = sadd.s32 1, %s4640_s14 }
  0x2d   : > { %p48_p2 = scmp.ne.s32.totalorder %s4640_s14, %s4636_s13  ;;  %p49_p4 = scmp.eq.s32.totalorder %s4652_s17, 0 }
  0x2e   : > { %s6517_s28 = smov (%p34_p1, %s32_s28), 0  ;;  %p6213_p8 = scmp.ne.s32.totalorder %s6207_s21, 0 }
  0x2f   : > { %p4775_p6 = por %p49_p4, %p48_p2  ;;  %s36_s30 = ssub.s32 %s4648_s16, %s6517_s28 }
  0x30   : > { %p4781_p10 = por %p6213_p8, %p48_p2  ;;  %p4449_p12 = scmp.lt.s32.totalorder %s4652_s17, 2 }
  0x31   : > { %p39_p11 = scmp.eq.s32.totalorder %s36_s30, 0  ;;  %s164_s26 = sand.u32 1, %s4640_s14  }
  0x32   : > { %s3901_s4 = sshll.u32 %s164_s26, 9  ;;  %s4170_s6 = sshll.u32 %s4648_s16, 13 }
  0x33   : > { %s4790_s5 = scalar_select %p39_p11, %s4640_s14, %s41_s25  }
  0x34   : > { %s4796_s9 = scalar_lea.hbm %s6113_s0, %s4170_s6  ;;  %s168_s21 = scalar_lea.vmem [#allocation2], %s3901_s4 }
  0x35   : > { %s177_s18 = sshll.u32 %s168_s21, 4  ;;  %p4802_p13 = pnand %p4449_p12, %p4775_p6  ;;  %s4798_s18 = int_to_ptr.vmem [resolvable:$true] %s177_s18 }
  0x36   : > { %s4806_s25 = scalar_lea.sflag [#allocation3], %s164_s26  ;;  %s4536_s30 = scalar_lea.hbm %s4796_s9, 8192 }
  0x37   : > { %p4537_p0 = scmp.ne.s32.totalorder %s4796_s9, %s4536_s30  ;;  %p4538_p3 = pneg %p4802_p13 }
  0x38   : > { %s4541_s29 = scalar_lea.hbm %s6113_s0, 16384  ;;  %p4542_p9 = scmp.lt.u32.totalorder %s4796_s9, %s6113_s0 }
  0x39   : > { %p4539_p5 = pnand %p4538_p3, %p4537_p0  ;;  %p4543_p1 = scmp.lt.u32.totalorder %s4541_s29, %s4536_s30 }
  0x3a   : > { %p4545_p4 = scmp.lt.u32.totalorder %s4536_s30, %s4796_s9 }
  0x3b   : > { %p4540_p7 = pneg %p4539_p5  ;;  %p4544_p2 = por %p4543_p1, %p4542_p9 }
  0x3d   : > { %p4546_p6 = por %p4545_p4, %p4544_p2 }
  0x3f   : > { %p4547_p8 = pnand %p4546_p6, %p4540_p7 }
  0x41   : > { %4550 = shalt.err (!%p4547_p8)
}
  0x42   : > { %s4551_s26 = scalar_lea.vmem %s4798_s18, 8192  ;;  %s4657_s21 = smov [#allocation2]  }
  0x43   : > { %p4552_p12 = scmp.ne.s32.totalorder %s4798_s18, %s4551_s26  ;;  %s4556_s4 = sshll.u32 %s4657_s21, 4  ;;  %s4557_s4 = int_to_ptr.vmem [resolvable:$false] %s4556_s4 }
  0x44   : > { %s4558_s6 = scalar_lea.vmem %s4557_s4, 16384  ;;  %p4559_p5 = scmp.lt.s32.totalorder %s4798_s18, %s4557_s4 }
  0x45   : > { %p4554_p11 = pnand %p4552_p12, %p4538_p3  ;;  %p4560_p9 = scmp.lt.s32.totalorder %s4558_s6, %s4551_s26 }
  0x47   : > { %p4555_p0 = pneg %p4554_p11  ;;  %p4561_p1 = por %p4560_p9, %p4559_p5 }
  0x49   : > { %p4562_p2 = pnand %p4561_p1, %p4555_p0 }
  0x4b   : > { %4565 = shalt.err (!%p4562_p2)
}
  0x4c   : > { %4443 = dma.hbm_to_vmem [thread:$0]  (!%p4802_p13), %s4796_s9, 8192, %s4798_s18, %s4806_s25, %s4655_s10, %s4655_s10, %s4656_s11  }
  0x4d   : > { %p6216_p3 = scmp.ne.s32.totalorder %s6210_s24, 0 }
  0x4f   : > { %189 = sbr.rel (%p6216_p3) target bundleno = 685 (0x2ad), region = 32 }
  0x56   : > { %s4840_s30 = sand.u32 1, %s4636_s13   ;;  %p6217_p7 = scmp.ne.s32.totalorder %s6208_s22, 0 }
  0x57   : > { %s3905_s29 = sshll.u32 %s4840_s30, 9  ;;  %s192_s7 = scalar_lea.sflag [#allocation3], %s4840_s30 }
  0x58   : > { %s4844_s8 = scalar_lea.vmem [#allocation2], %s3905_s29 }
  0x59   : > { %4619 = dma.done.wait (%p6217_p7), %s192_s7, 8192  }
  0x5a   : > { %4621 = vsyncadd (%p6217_p7), %s192_s7, 4294959104  ;;  %p6218_p13 = scmp.ne.s32.totalorder %s6206_s20, 0 }
  0x5c   : > { %4623 = dma.done.wait (%p6218_p13), [#allocation6], 2048  }
  0x5d   : > { %4625 = vsyncadd (%p6218_p13), [#allocation6], 4294965248  ;;  %v288_v0 = vld [vmem:[#allocation5] sm:$0xff]  ;;  %v289_v1 = vld [vmem:[#allocation5 + $0x8] sm:$0xff]  ;;  %vm3704_vm0 = vcmask 1041409   ;;  %vm3706_vm1 = vcmask 1042434  }
  0x5e   : > { %v290_v2 = vld [vmem:[#allocation5 + $0x10] sm:$0xff]  ;;  %v4380_v3 = vpack.c.bf16 %v289_v1, %v288_v0  ;;  %v291_v4 = vld [vmem:[#allocation5 + $0x18] sm:$0xff]  ;;  %v292_v6 = vld [vmem:[#allocation5 + $0x20] sm:$0xff]  ;;  %vm3708_vm2 = vcmask 1043459   ;;  %vm3710_vm3 = vcmask 1044484   ;;  %vm3712_vm4 = vcmask 1045509  }
  0x5f   : > { %v4384_v5 = vpack.c.bf16 %v291_v4, %v290_v2  ;;  %v293_v7 = vld [vmem:[#allocation5 + $0x28] sm:$0xff]  ;;  %v224_v9 = vld [vmem:[%s4844_s8] sm:$0xff]  ;;  %v294_v11 = vld [vmem:[#allocation5 + $0x30] sm:$0xff]  ;;  %vm3714_vm5 = vcmask 1046534   ;;  %vm3716_vm6 = vcmask 1047559   ;;  %s3907_s24 = sshll.u32 %s4840_s30, 6 }
  0x60   : > { %4381 = vmatprep.subr.bf16.mxu0 %v4380_v3  ;;  %4412 = vmatprep.subr.bf16.mxu1 %v4380_v3  ;;  %v4388_v8 = vpack.c.bf16 %v293_v7, %v292_v6  ;;  %v256_v10 = vld [vmem:[%s4844_s8 + $0x100] sm:$0xff]  ;;  %v295_v12 = vld [vmem:[#allocation5 + $0x38] sm:$0xff]  ;;  %v297_v15 = vld [vmem:[#allocation5 + $0x48] sm:$0xff]  ;;  %s5414_s10 = scalar_lea.vmem [#allocation7], %s3907_s24  ;;  %s4171_s25 = sshll.u32 %s4644_s15, 10 }
  0x61   : > { %4383 = vmatpush3.bf16.msra.mxu0 %v4380_v3  ;;  %4420 = vmatpush3.bf16.msra.mxu1 %v4380_v3  ;;  %v4392_v13 = vpack.c.bf16 %v295_v12, %v294_v11  ;;  %v296_v14 = vld [vmem:[#allocation5 + $0x40] sm:$0xff]  ;;  %v298_v17 = vld [vmem:[#allocation5 + $0x50] sm:$0xff]  ;;  %v299_v18 = vld [vmem:[#allocation5 + $0x58] sm:$0xff]  ;;  %s3799_s26 = sshll.u32 %s5414_s10, 4  ;;  %s6058_s4 = scalar_lea.hbm %s6116_s3, %s4171_s25  ;;  %s6060_s26 = int_to_ptr.vmem [resolvable:$true] %s3799_s26 }
  0x62   : > { %4385 = vmatprep.subr.bf16.mxu0 %v4384_v5  ;;  %4413 = vmatprep.subr.bf16.mxu1 %v4384_v5  ;;  %v4396_v16 = vpack.c.bf16 %v297_v15, %v296_v14  ;;  %v4400_v19 = vpack.c.bf16 %v299_v18, %v298_v17  ;;  %v300_v20 = vld [vmem:[#allocation5 + $0x60] sm:$0xff]  ;;  %v301_v21 = vld [vmem:[#allocation5 + $0x68] sm:$0xff]  ;;  %v302_v23 = vld [vmem:[#allocation5 + $0x70] sm:$0xff]  ;;  %s3784_s6 = scalar_lea.sflag [#allocation4], %s4840_s30  ;;  %s4566_s29 = scalar_lea.vmem %s6060_s26, 1024 }
  0x63   : > { %4284 = vmatprep.mubr.f32.mxu0 %v224_v9  ;;  %4332 = vmatprep.mubr.f32.mxu1 %v256_v10  ;;  %v4404_v22 = vpack.c.bf16 %v301_v21, %v300_v20  ;;  %v303_v24 = vld [vmem:[#allocation5 + $0x78] sm:$0xff]  ;;  %v225_v26 = vld [vmem:[%s4844_s8 + $0x8] sm:$0xff]  ;;  %v226_v28 = vld [vmem:[%s4844_s8 + $0x10] sm:$0xff]  ;;  %p4567_p4 = scmp.ne.s32.totalorder %s6060_s26, %s4566_s29  ;;  %s4659_s7 = smov [#allocation7]  }
  0x64   : > { %v4408_v25 = vpack.c.bf16 %v303_v24, %v302_v23  ;;  %v257_v27 = vld [vmem:[%s4844_s8 + $0x108] sm:$0xff]  ;;  %v258_v29 = vld [vmem:[%s4844_s8 + $0x110] sm:$0xff]  ;;  %v227_v30 = vld [vmem:[%s4844_s8 + $0x18] sm:$0xff]  ;;  %v4658_v24 = vmov 1983009808  }
  0x65   : > { %4387 = vmatpush3.bf16.msra.mxu0 %v4384_v5  ;;  %4421 = vmatpush3.bf16.msra.mxu1 %v4384_v5  ;;  %v259_v31 = vld [vmem:[%s4844_s8 + $0x118] sm:$0xff]  ;;  %v228_v32 = vld [vmem:[%s4844_s8 + $0x20] sm:$0xff]  ;;  %v229_v34 = vld [vmem:[%s4844_s8 + $0x28] sm:$0xff]  ;;  %p4568_p6 = pnand %p4567_p4, %p4781_p10 }
  0x66   : > { %4389 = vmatprep.subr.bf16.mxu0 %v4388_v8  ;;  %4414 = vmatprep.subr.bf16.mxu1 %v4388_v8  ;;  %v260_v33 = vld [vmem:[%s4844_s8 + $0x120] sm:$0xff]  ;;  %v261_v35 = vld [vmem:[%s4844_s8 + $0x128] sm:$0xff]  ;;  %v230_v36 = vld [vmem:[%s4844_s8 + $0x30] sm:$0xff] }
  0x67   : > { %v262_v37 = vld [vmem:[%s4844_s8 + $0x130] sm:$0xff]  ;;  %v231_v38 = vld [vmem:[%s4844_s8 + $0x38] sm:$0xff]  ;;  %v232_v40 = vld [vmem:[%s4844_s8 + $0x40] sm:$0xff]  ;;  %p4569_p8 = pneg %p4568_p6 }
  0x68   : > { %v263_v39 = vld [vmem:[%s4844_s8 + $0x138] sm:$0xff]  ;;  %v264_v41 = vld [vmem:[%s4844_s8 + $0x140] sm:$0xff]  ;;  %v233_v42 = vld [vmem:[%s4844_s8 + $0x48] sm:$0xff] }
  0x69   : > { %4391 = vmatpush3.bf16.msra.mxu0 %v4388_v8  ;;  %4422 = vmatpush3.bf16.msra.mxu1 %v4388_v8  ;;  %v265_v43 = vld [vmem:[%s4844_s8 + $0x148] sm:$0xff]  ;;  %v234_v44 = vld [vmem:[%s4844_s8 + $0x50] sm:$0xff]  ;;  %v235_v46 = vld [vmem:[%s4844_s8 + $0x58] sm:$0xff] }
  0x6a   : > { %4393 = vmatprep.subr.bf16.mxu0 %v4392_v13  ;;  %4415 = vmatprep.subr.bf16.mxu1 %v4392_v13  ;;  %v266_v45 = vld [vmem:[%s4844_s8 + $0x150] sm:$0xff]  ;;  %v267_v47 = vld [vmem:[%s4844_s8 + $0x158] sm:$0xff]  ;;  %v236_v48 = vld [vmem:[%s4844_s8 + $0x60] sm:$0xff] }
  0x6b   : > { %v268_v49 = vld [vmem:[%s4844_s8 + $0x160] sm:$0xff]  ;;  %v237_v50 = vld [vmem:[%s4844_s8 + $0x68] sm:$0xff]  ;;  %v238_v52 = vld [vmem:[%s4844_s8 + $0x70] sm:$0xff] }
  0x6c   : > { %v269_v51 = vld [vmem:[%s4844_s8 + $0x168] sm:$0xff]  ;;  %v270_v53 = vld [vmem:[%s4844_s8 + $0x170] sm:$0xff]  ;;  %v239_v54 = vld [vmem:[%s4844_s8 + $0x78] sm:$0xff] }
  0x6d   : > { %4395 = vmatpush3.bf16.msra.mxu0 %v4392_v13  ;;  %4423 = vmatpush3.bf16.msra.mxu1 %v4392_v13  ;;  %v271_v55 = vld [vmem:[%s4844_s8 + $0x178] sm:$0xff]  ;;  %v240_v56 = vld [vmem:[%s4844_s8 + $0x80] sm:$0xff]  ;;  %v241_v58 = vld [vmem:[%s4844_s8 + $0x88] sm:$0xff] }
  0x6e   : > { %4397 = vmatprep.subr.bf16.mxu0 %v4396_v16  ;;  %4416 = vmatprep.subr.bf16.mxu1 %v4396_v16  ;;  %v272_v57 = vld [vmem:[%s4844_s8 + $0x180] sm:$0xff]  ;;  %v273_v59 = vld [vmem:[%s4844_s8 + $0x188] sm:$0xff]  ;;  %v242_v60 = vld [vmem:[%s4844_s8 + $0x90] sm:$0xff] }
  0x6f   : > { %v274_v61 = vld [vmem:[%s4844_s8 + $0x190] sm:$0xff]  ;;  %v243_v62 = vld [vmem:[%s4844_s8 + $0x98] sm:$0xff]  ;;  %v244_v0 = vld [vmem:[%s4844_s8 + $0xa0] sm:$0xff] }
  0x70   : > { %v275_v63 = vld [vmem:[%s4844_s8 + $0x198] sm:$0xff]  ;;  %v276_v1 = vld [vmem:[%s4844_s8 + $0x1a0] sm:$0xff]  ;;  %v245_v2 = vld [vmem:[%s4844_s8 + $0xa8] sm:$0xff] }
  0x71   : > { %4399 = vmatpush3.bf16.msra.mxu0 %v4396_v16  ;;  %4424 = vmatpush3.bf16.msra.mxu1 %v4396_v16  ;;  %v277_v3 = vld [vmem:[%s4844_s8 + $0x1a8] sm:$0xff]  ;;  %v246_v4 = vld [vmem:[%s4844_s8 + $0xb0] sm:$0xff]  ;;  %v247_v6 = vld [vmem:[%s4844_s8 + $0xb8] sm:$0xff] }
  0x72   : > { %4401 = vmatprep.subr.bf16.mxu0 %v4400_v19  ;;  %4417 = vmatprep.subr.bf16.mxu1 %v4400_v19  ;;  %v278_v5 = vld [vmem:[%s4844_s8 + $0x1b0] sm:$0xff]  ;;  %v279_v7 = vld [vmem:[%s4844_s8 + $0x1b8] sm:$0xff]  ;;  %v248_v8 = vld [vmem:[%s4844_s8 + $0xc0] sm:$0xff] }
  0x73   : > { %v280_v9 = vld [vmem:[%s4844_s8 + $0x1c0] sm:$0xff]  ;;  %v249_v10 = vld [vmem:[%s4844_s8 + $0xc8] sm:$0xff]  ;;  %v250_v12 = vld [vmem:[%s4844_s8 + $0xd0] sm:$0xff] }
  0x74   : > { %v281_v11 = vld [vmem:[%s4844_s8 + $0x1c8] sm:$0xff]  ;;  %v282_v13 = vld [vmem:[%s4844_s8 + $0x1d0] sm:$0xff]  ;;  %v251_v14 = vld [vmem:[%s4844_s8 + $0xd8] sm:$0xff] }
  0x75   : > { %4403 = vmatpush3.bf16.msra.mxu0 %v4400_v19  ;;  %4425 = vmatpush3.bf16.msra.mxu1 %v4400_v19  ;;  %v283_v15 = vld [vmem:[%s4844_s8 + $0x1d8] sm:$0xff]  ;;  %v252_v16 = vld [vmem:[%s4844_s8 + $0xe0] sm:$0xff]  ;;  %v253_v18 = vld [vmem:[%s4844_s8 + $0xe8] sm:$0xff] }
  0x76   : > { %4405 = vmatprep.subr.bf16.mxu0 %v4404_v22  ;;  %4418 = vmatprep.subr.bf16.mxu1 %v4404_v22  ;;  %v284_v17 = vld [vmem:[%s4844_s8 + $0x1e0] sm:$0xff]  ;;  %v285_v19 = vld [vmem:[%s4844_s8 + $0x1e8] sm:$0xff]  ;;  %v254_v20 = vld [vmem:[%s4844_s8 + $0xf0] sm:$0xff] }
  0x77   : > { %v286_v21 = vld [vmem:[%s4844_s8 + $0x1f0] sm:$0xff]  ;;  %v287_v23 = vld [vmem:[%s4844_s8 + $0x1f8] sm:$0xff] }
  0x79   : > { %4407 = vmatpush3.bf16.msra.mxu0 %v4404_v22  ;;  %4426 = vmatpush3.bf16.msra.mxu1 %v4404_v22  ;;  %v255_v22 = vld [vmem:[%s4844_s8 + $0xf8] sm:$0xff]  ;;  %s4570_s8 = sshll.u32 %s4659_s7, 4  ;;  %s4571_s8 = int_to_ptr.vmem [resolvable:$false] %s4570_s8 }
  0x7a   : > { %4409 = vmatprep.subr.bf16.mxu0 %v4408_v25  ;;  %4419 = vmatprep.subr.bf16.mxu1 %v4408_v25  ;;  %s4572_s20 = scalar_lea.vmem %s4571_s8, 2048  ;;  %p4573_p12 = scmp.lt.s32.totalorder %s6060_s26, %s4571_s8 }
  0x7b   : > { %p4574_p11 = scmp.lt.s32.totalorder %s4572_s20, %s4566_s29 }
  0x7d   : > { %4411 = vmatpush3.bf16.msra.mxu0 %v4408_v25  ;;  %4427 = vmatpush3.bf16.msra.mxu1 %v4408_v25  ;;  %v762_v25 = vunpack.c.l.s4 %v4658_v24  ;;  %p4575_p0 = por %p4574_p11, %p4573_p12 }
  0x7f   : > { %p4576_p5 = pnand %p4575_p0, %p4569_p8 }
  0x80   : > { %4285 = vmatmul.mubr.f32.vlgmr.msra.gmra.mrb[0].mxu0 %v225_v26  ;;  %4333 = vmatmul.mubr.f32.vlgmr.msra.gmra.mrb[0].mxu1 %v257_v27  ;;  %v764_v26 = vlaneseq  ;;  %v763_v27 = vunpack.c.0.s8 %v762_v25 }
  0x81   : > { %4287 = vmatprep.mubr.f32.mxu0 %v226_v28  ;;  %4335 = vmatprep.mubr.f32.mxu1 %v258_v29  ;;  %v4921_v29 = vld [vmem:[%s6115_s2] ss:$0 sm:$0xff] }
  0x82   : > { %v765_v28 = vshrl.u32 %v764_v26, 7 }
  0x84   : > { %4288 = vmatmul.mubr.f32.gmra.mrb[2].mxu0 %v227_v30  ;;  %4336 = vmatmul.mubr.f32.gmra.mrb[2].mxu1 %v259_v31  ;;  %v4923_v30 = vsub.s32 %v763_v27, %v765_v28 }
  0x85   : > { %4290 = vmatprep.mubr.f32.mxu0 %v228_v32  ;;  %4338 = vmatprep.mubr.f32.mxu1 %v260_v33 }
  0x88   : > { %4291 = vmatmul.mubr.f32.gmra.mrb[4].mxu0 %v229_v34  ;;  %4339 = vmatmul.mubr.f32.gmra.mrb[4].mxu1 %v261_v35 }
  0x89   : > { %4293 = vmatprep.mubr.f32.mxu0 %v230_v36  ;;  %4341 = vmatprep.mubr.f32.mxu1 %v262_v37 }
  0x8c   : > { %4294 = vmatmul.mubr.f32.gmra.mrb[6].mxu0 %v231_v38  ;;  %4342 = vmatmul.mubr.f32.gmra.mrb[6].mxu1 %v263_v39  ;;  %v4929_v39 = vsub.s32 0, %v765_v28 }
  0x8d   : > { %4296 = vmatprep.mubr.f32.mxu0 %v232_v40  ;;  %4344 = vmatprep.mubr.f32.mxu1 %v264_v41 }
  0x90   : > { %4297 = vmatmul.mubr.f32.gmra.mrb[8].mxu0 %v233_v42  ;;  %4345 = vmatmul.mubr.f32.gmra.mrb[8].mxu1 %v265_v43 }
  0x91   : > { %4299 = vmatprep.mubr.f32.mxu0 %v234_v44  ;;  %4347 = vmatprep.mubr.f32.mxu1 %v266_v45 }
  0x94   : > { %4300 = vmatmul.mubr.f32.gmra.mrb[10].mxu0 %v235_v46  ;;  %4348 = vmatmul.mubr.f32.gmra.mrb[10].mxu1 %v267_v47 }
  0x95   : > { %4302 = vmatprep.mubr.f32.mxu0 %v236_v48  ;;  %4350 = vmatprep.mubr.f32.mxu1 %v268_v49 }
  0x98   : > { %4303 = vmatmul.mubr.f32.gmra.mrb[12].mxu0 %v237_v50  ;;  %4351 = vmatmul.mubr.f32.gmra.mrb[12].mxu1 %v269_v51 }
  0x99   : > { %4305 = vmatprep.mubr.f32.mxu0 %v238_v52  ;;  %4353 = vmatprep.mubr.f32.mxu1 %v270_v53 }
  0x9c   : > { %4306 = vmatmul.mubr.f32.gmra.mrb[14].mxu0 %v239_v54  ;;  %4354 = vmatmul.mubr.f32.gmra.mrb[14].mxu1 %v271_v55 }
  0x9d   : > { %4308 = vmatprep.mubr.f32.mxu0 %v240_v56  ;;  %4356 = vmatprep.mubr.f32.mxu1 %v272_v57 }
  0xa0   : > { %4309 = vmatmul.mubr.f32.gmra.mrb[16].mxu0 %v241_v58  ;;  %4357 = vmatmul.mubr.f32.gmra.mrb[16].mxu1 %v273_v59 }
  0xa1   : > { %4311 = vmatprep.mubr.f32.mxu0 %v242_v60  ;;  %4359 = vmatprep.mubr.f32.mxu1 %v274_v61 }
  0xa4   : > { %4312 = vmatmul.mubr.f32.gmra.mrb[18].mxu0 %v243_v62  ;;  %4360 = vmatmul.mubr.f32.gmra.mrb[18].mxu1 %v275_v63 }
  0xa5   : > { %4314 = vmatprep.mubr.f32.mxu0 %v244_v0  ;;  %4362 = vmatprep.mubr.f32.mxu1 %v276_v1 }
  0xa8   : > { %4315 = vmatmul.mubr.f32.gmra.mrb[20].mxu0 %v245_v2  ;;  %4363 = vmatmul.mubr.f32.gmra.mrb[20].mxu1 %v277_v3 }
  0xa9   : > { %4317 = vmatprep.mubr.f32.mxu0 %v246_v4  ;;  %4365 = vmatprep.mubr.f32.mxu1 %v278_v5 }
  0xac   : > { %4318 = vmatmul.mubr.f32.gmra.mrb[22].mxu0 %v247_v6  ;;  %4366 = vmatmul.mubr.f32.gmra.mrb[22].mxu1 %v279_v7 }
  0xad   : > { %4320 = vmatprep.mubr.f32.mxu0 %v248_v8  ;;  %4368 = vmatprep.mubr.f32.mxu1 %v280_v9 }
  0xb0   : > { %4321 = vmatmul.mubr.f32.gmra.mrb[24].mxu0 %v249_v10  ;;  %4369 = vmatmul.mubr.f32.gmra.mrb[24].mxu1 %v281_v11 }
  0xb1   : > { %4323 = vmatprep.mubr.f32.mxu0 %v250_v12  ;;  %4371 = vmatprep.mubr.f32.mxu1 %v282_v13 }
  0xb4   : > { %4324 = vmatmul.mubr.f32.gmra.mrb[26].mxu0 %v251_v14  ;;  %4372 = vmatmul.mubr.f32.gmra.mrb[26].mxu1 %v283_v15 }
  0xb5   : > { %4326 = vmatprep.mubr.f32.mxu0 %v252_v16  ;;  %4374 = vmatprep.mubr.f32.mxu1 %v284_v17 }
  0xb8   : > { %4327 = vmatmul.mubr.f32.gmra.mrb[28].mxu0 %v253_v18  ;;  %4375 = vmatmul.mubr.f32.gmra.mrb[28].mxu1 %v285_v19 }
  0xb9   : > { %4329 = vmatprep.mubr.f32.mxu0 %v254_v20  ;;  %4377 = vmatprep.mubr.f32.mxu1 %v286_v21 }
  0xbc   : > { %4330 = vmatmul.mubr.f32.gmra.mrb[30].mxu0 %v255_v22  ;;  %4378 = vmatmul.mubr.f32.gmra.mrb[30].mxu1 %v287_v23 }
 0x153   : > { %v4286_v31 = vpop.f32.mrb[0].mxu0  ;;  %v4334_v32 = vpop.f32.mrb[0].mxu1 }
 0x154   : > { %v383_v33 = vadd.f32 %v4286_v31, %v4921_v29  ;;  %v543_v34 = vadd.f32 %v4334_v32, %v4921_v29  ;;  %v377_v35 = vpop.f32.mrb[1].mxu0  ;;  %v537_v36 = vpop.f32.mrb[1].mxu1 }
 0x155   : > { %v378_v37 = vadd.f32 %v4921_v29, %v377_v35  ;;  %v538_v38 = vadd.f32 %v4921_v29, %v537_v36 }
 0x156   : > { %v777_v40 = vcombine.high %v383_v33, %v383_v33  ;;  %v784_v41 = vrot.slane %v383_v33, %v4923_v30  ;;  %v1321_v42 = vcombine.high %v543_v34, %v543_v34  ;;  %v1328_v43 = vrot.slane %v543_v34, %v4923_v30 }
 0x157   : > { %v760_v44 = vcombine.high %v378_v37, %v378_v37  ;;  %v767_v45 = vrot.slane %v378_v37, %v4923_v30  ;;  %v1304_v46 = vcombine.high %v538_v38, %v538_v38  ;;  %v1311_v47 = vrot.slane %v538_v38, %v4923_v30  ;;  %v4289_v48 = vpop.f32.mrb[2].mxu0  ;;  %v4337_v49 = vpop.f32.mrb[2].mxu1 }
 0x158   : > { %v791_v50 = vrot.slane %v777_v40, %v4923_v30  ;;  %v792_v51 = vcombine.high %v784_v41, %v784_v41  ;;  %v3913_v52 = vrot.slane %v784_v41, 9  ;;  %v1335_v53 = vrot.slane %v1321_v42, %v4923_v30  ;;  %v387_v54 = vpop.f32.mrb[3].mxu0  ;;  %v547_v55 = vpop.f32.mrb[3].mxu1 }
 0x159   : > { %v1336_v56 = vcombine.high %v1328_v43, %v1328_v43  ;;  %v4041_v57 = vrot.slane %v1328_v43, 9  ;;  %v774_v58 = vrot.slane %v760_v44, %v4923_v30  ;;  %v775_v59 = vcombine.high %v767_v45, %v767_v45 }
 0x15a   : > { %v793_v60 = vcombine.high %v791_v50, %v791_v50  ;;  %v3914_v61 = vrot.slane %v792_v51, 9  ;;  %v3915_v62 = vrot.slane %v791_v50, 9  ;;  %v4938_v63 = vmax.f32 %v784_v41, %v3913_v52 }
 0x15b   : > { %v1337_v0 = vcombine.high %v1335_v53, %v1335_v53  ;;  %v4042_v1 = vrot.slane %v1336_v56, 9  ;;  %v4043_v2 = vrot.slane %v1335_v53, 9  ;;  %v4940_v3 = vmax.f32 %v1328_v43, %v4041_v57  ;;  %v4942_v4 = vpop.f32.mrb[4].mxu0  ;;  %v4944_v5 = vpop.f32.mrb[4].mxu1 }
 0x15c   : > { %v3916_v6 = vrot.slane %v793_v60, 9  ;;  %v4946_v7 = vmax.f32 %v792_v51, %v3914_v61  ;;  %v4948_v8 = vmax.f32 %v791_v50, %v3915_v62  ;;  %v776_v9 = vcombine.high %v774_v58, %v774_v58  ;;  %v4950_v10 = vpop.f32.mrb[5].mxu0  ;;  %v4952_v11 = vpop.f32.mrb[5].mxu1 }
 0x15d   : > { %v4044_v12 = vrot.slane %v1337_v0, 9  ;;  %v4954_v13 = vmax.f32 %v1336_v56, %v4042_v1  ;;  %v4956_v14 = vmax.f32 %v1335_v53, %v4043_v2  ;;  %v3909_v15 = vrot.slane %v767_v45, 9 }
 0x15e   : > { %v4958_v16 = vmax.f32 %v793_v60, %v3916_v6  ;;  %v3910_v17 = vrot.slane %v775_v59, 9  ;;  %v3911_v18 = vrot.slane %v774_v58, 9  ;;  %v3912_v19 = vrot.slane %v776_v9, 9 }
 0x15f   : > { %v4960_v20 = vmax.f32 %v1337_v0, %v4044_v12  ;;  %v4962_v21 = vmax.f32 %v767_v45, %v3909_v15  ;;  %v1318_v22 = vrot.slane %v1304_v46, %v4923_v30  ;;  %v1319_v23 = vcombine.high %v1311_v47, %v1311_v47  ;;  %v4965_v24 = vpop.f32.mrb[6].mxu0  ;;  %v4967_v25 = vpop.f32.mrb[6].mxu1 }
 0x160   : > { %v4969_v26 = vmax.f32 %v775_v59, %v3910_v17  ;;  %v4971_v27 = vmax.f32 %v774_v58, %v3911_v18  ;;  %v4973_v28 = vmax.f32 %v776_v9, %v3912_v19  ;;  %v4037_v31 = vrot.slane %v1311_v47, 9  ;;  %v4975_v32 = vpop.f32.mrb[7].mxu0  ;;  %v4977_v33 = vpop.f32.mrb[7].mxu1 }
 0x161   : > { %v1320_v35 = vcombine.high %v1318_v22, %v1318_v22  ;;  %v4038_v36 = vrot.slane %v1319_v23, 9  ;;  %v4039_v37 = vrot.slane %v1318_v22, 9  ;;  %v393_v46 = vadd.f32 %v4289_v48, %v4921_v29 }
 0x162   : > { %v4987_v42 = vmax.f32 %v1311_v47, %v4037_v31  ;;  %v553_v53 = vadd.f32 %v4337_v49, %v4921_v29  ;;  %v388_v56 = vadd.f32 %v4921_v29, %v387_v54  ;;  %v548_v47 = vadd.f32 %v4921_v29, %v547_v55 }
 0x163   : > { %v4040_v43 = vrot.slane %v1320_v35, 9  ;;  %v4989_v44 = vmax.f32 %v1319_v23, %v4038_v36  ;;  %v4991_v45 = vmax.f32 %v1318_v22, %v4039_v37  ;;  %v4994_v50 = vpop.f32.mrb[8].mxu0  ;;  %v4996_v51 = vpop.f32.mrb[8].mxu1  ;;  %v811_v61 = vcombine.high %v393_v46, %v393_v46 }
 0x164   : > { %v5003_v57 = vpop.f32.mrb[9].mxu0  ;;  %v5005_v58 = vpop.f32.mrb[9].mxu1  ;;  %v818_v62 = vrot.slane %v393_v46, %v4923_v30  ;;  %v1355_v49 = vcombine.high %v553_v53, %v553_v53  ;;  %v1362_v54 = vrot.slane %v553_v53, %v4923_v30  ;;  %v794_v0 = vcombine.high %v388_v56, %v388_v56 }
 0x165   : > { %v5007_v59 = vmax.f32 %v1320_v35, %v4040_v43  ;;  %v825_v1 = vrot.slane %v811_v61, %v4923_v30  ;;  %v801_v2 = vrot.slane %v388_v56, %v4923_v30  ;;  %v1338_v6 = vcombine.high %v548_v47, %v548_v47 }
 0x166   : > { %v826_v15 = vcombine.high %v818_v62, %v818_v62  ;;  %v3921_v17 = vrot.slane %v818_v62, 9  ;;  %v1369_v18 = vrot.slane %v1355_v49, %v4923_v30  ;;  %v1370_v19 = vcombine.high %v1362_v54, %v1362_v54 }
 0x167   : > { %v5019_v9 = vpop.f32.mrb[10].mxu0  ;;  %v5021_v12 = vpop.f32.mrb[10].mxu1  ;;  %v827_v31 = vcombine.high %v825_v1, %v825_v1  ;;  %v3923_v35 = vrot.slane %v825_v1, 9  ;;  %v4049_v36 = vrot.slane %v1362_v54, 9  ;;  %v808_v37 = vrot.slane %v794_v0, %v4923_v30 }
 0x168   : > { %v5024_v22 = vpop.f32.mrb[11].mxu0  ;;  %v5026_v23 = vpop.f32.mrb[11].mxu1  ;;  %v3922_v43 = vrot.slane %v826_v15, 9  ;;  %v5029_v46 = vmax.f32 %v818_v62, %v3921_v17  ;;  %v1371_v53 = vcombine.high %v1369_v18, %v1369_v18  ;;  %v4050_v56 = vrot.slane %v1370_v19, 9 }
 0x169   : > { %v3924_v61 = vrot.slane %v827_v31, 9  ;;  %v5031_v55 = vmax.f32 %v825_v1, %v3923_v35  ;;  %v4051_v60 = vrot.slane %v1369_v18, 9  ;;  %v5033_v49 = vmax.f32 %v1362_v54, %v4049_v36 }
 0x16a   : > { %v5039_v41 = vmax.f32 %v826_v15, %v3922_v43  ;;  %v4052_v40 = vrot.slane %v1371_v53, 9  ;;  %v5041_v38 = vmax.f32 %v1370_v19, %v4050_v56  ;;  %v809_v0 = vcombine.high %v801_v2, %v801_v2 }
 0x16b   : > { %6219 = vst [vmem:[#allocation11_spill] sm:$0xff] %v5031_v55  ;;  %v5035_v48 = vpop.f32.mrb[12].mxu0  ;;  %v5037_v52 = vpop.f32.mrb[12].mxu1  ;;  %v5047_v34 = vmax.f32 %v827_v31, %v3924_v61  ;;  %v5049_v1 = vmax.f32 %v1369_v18, %v4051_v60  ;;  %v810_v54 = vcombine.high %v808_v37, %v808_v37  ;;  %v3917_v35 = vrot.slane %v801_v2, 9 }
 0x16c   : > { %6220 = vst [vmem:[#allocation12_spill] sm:$0xff] %v5035_v48  ;;  %6221 = vst [vmem:[#allocation13_spill] sm:$0xff] %v5037_v52  ;;  %v5043_v62 = vpop.f32.mrb[13].mxu0  ;;  %v5045_v17 = vpop.f32.mrb[13].mxu1  ;;  %v5051_v36 = vmax.f32 %v1371_v53, %v4052_v40  ;;  %v3918_v48 = vrot.slane %v809_v0, 9  ;;  %v3919_v52 = vrot.slane %v808_v37, 9  ;;  %v1345_v15 = vrot.slane %v548_v47, %v4923_v30 }
 0x16d   : > { %6222 = vst [vmem:[#allocation14_spill] sm:$0xff] %v5039_v41  ;;  %6223 = vst [vmem:[#allocation15_spill] sm:$0xff] %v5041_v38  ;;  %v3920_v43 = vrot.slane %v810_v54, 9  ;;  %v5054_v19 = vmax.f32 %v801_v2, %v3917_v35  ;;  %v1352_v56 = vrot.slane %v1338_v6, %v4923_v30 }
 0x16e   : > { %6224 = vst [vmem:[#allocation16_spill] sm:$0xff] %v5043_v62  ;;  %6225 = vst [vmem:[#allocation17_spill] sm:$0xff] %v5045_v17  ;;  %v403_v17 = vadd.f32 %v4942_v4, %v4921_v29  ;;  %v5063_v18 = vmax.f32 %v809_v0, %v3918_v48  ;;  %v5065_v40 = vmax.f32 %v808_v37, %v3919_v52  ;;  %v4045_v61 = vrot.slane %v1345_v15, 9 }
 0x16f   : > { %6226 = vst [vmem:[#allocation18_spill] sm:$0xff] %v5047_v34  ;;  %6227 = vst [vmem:[#allocation19_spill] sm:$0xff] %v5049_v1  ;;  %v5059_v31 = vpop.f32.mrb[14].mxu0  ;;  %v5061_v60 = vpop.f32.mrb[14].mxu1  ;;  %v1353_v53 = vcombine.high %v1345_v15, %v1345_v15  ;;  %v5071_v2 = vmax.f32 %v810_v54, %v3920_v43  ;;  %v1354_v4 = vcombine.high %v1352_v56, %v1352_v56  ;;  %v4047_v35 = vrot.slane %v1352_v56, 9 }
 0x170   : > { %6228 = vst [vmem:[#allocation20_spill] sm:$0xff] %v5051_v36  ;;  %6229 = vst [vmem:[#allocation21_spill] sm:$0xff] %v5059_v31  ;;  %v5067_v62 = vpop.f32.mrb[15].mxu0  ;;  %v5069_v47 = vpop.f32.mrb[15].mxu1  ;;  %v5079_v37 = vmax.f32 %v1345_v15, %v4045_v61  ;;  %v845_v43 = vcombine.high %v403_v17, %v403_v17  ;;  %v852_v52 = vrot.slane %v403_v17, %v4923_v30 }
 0x171   : > { %6230 = vst [vmem:[#allocation22_spill] sm:$0xff] %v5061_v60  ;;  %6231 = vst [vmem:[#allocation23_spill] sm:$0xff] %v5063_v18  ;;  %v4046_v48 = vrot.slane %v1353_v53, 9  ;;  %v5083_v54 = vmax.f32 %v1352_v56, %v4047_v35  ;;  %v563_v15 = vadd.f32 %v4944_v5, %v4921_v29 }
 0x172   : > { %6232 = vst [vmem:[#allocation24_spill] sm:$0xff] %v5065_v40  ;;  %6233 = vst [vmem:[#allocation25_spill] sm:$0xff] %v5067_v62  ;;  %v859_v35 = vrot.slane %v845_v43, %v4923_v30  ;;  %v860_v60 = vcombine.high %v852_v52, %v852_v52  ;;  %v3929_v17 = vrot.slane %v852_v52, 9 }
 0x173   : > { %6234 = vst [vmem:[#allocation26_spill] sm:$0xff] %v5069_v47  ;;  %6235 = vst [vmem:[#allocation27_spill] sm:$0xff] %v5071_v2  ;;  %v4048_v47 = vrot.slane %v1354_v4, 9  ;;  %v5085_v62 = vpop.f32.mrb[16].mxu0  ;;  %v5087_v6 = vpop.f32.mrb[16].mxu1  ;;  %v5089_v31 = vmax.f32 %v1353_v53, %v4046_v48  ;;  %v398_v53 = vadd.f32 %v4921_v29, %v4950_v10 }
 0x174   : > { %6236 = vst [vmem:[#allocation28_spill] sm:$0xff] %v5083_v54  ;;  %6237 = vst [vmem:[#allocation29_spill] sm:$0xff] %v5085_v62  ;;  %v5096_v61 = vpop.f32.mrb[17].mxu0  ;;  %v3930_v62 = vrot.slane %v860_v60, 9  ;;  %v5110_v56 = vmax.f32 %v852_v52, %v3929_v17  ;;  %v5113_v10 = vpop.f32.mrb[17].mxu1 }
 0x175   : > { %6238 = vst [vmem:[#allocation30_spill] sm:$0xff] %v5087_v6  ;;  %6239 = vst [vmem:[#allocation31_spill] sm:$0xff] %v5089_v31  ;;  %v5098_v0 = vmax.f32 %v1354_v4, %v4048_v47  ;;  %v1389_v6 = vcombine.high %v563_v15, %v563_v15  ;;  %v3931_v47 = vrot.slane %v859_v35, 9  ;;  %v1396_v4 = vrot.slane %v563_v15, %v4923_v30 }
 0x176   : > { %6240 = vst [vmem:[#allocation32_spill] sm:$0xff] %v5096_v61  ;;  %v861_v61 = vcombine.high %v859_v35, %v859_v35  ;;  %6242 = vst [vmem:[#allocation34_spill] sm:$0xff] %v5110_v56  ;;  %v828_v34 = vcombine.high %v398_v53, %v398_v53  ;;  %v5117_v38 = vmax.f32 %v860_v60, %v3930_v62 }
 0x177   : > { %6241 = vst [vmem:[#allocation33_spill] sm:$0xff] %v5098_v0  ;;  %v1403_v43 = vrot.slane %v1389_v6, %v4923_v30  ;;  %6243 = vst [vmem:[#allocation35_spill] sm:$0xff] %v5113_v10  ;;  %v5115_v48 = vmax.f32 %v859_v35, %v3931_v47  ;;  %v1404_v1 = vcombine.high %v1396_v4, %v1396_v4  ;;  %v4057_v54 = vrot.slane %v1396_v4, 9  ;;  %v5127_v55 = vpop.f32.mrb[18].mxu0 }
 0x178   : > { %v3932_v2 = vrot.slane %v861_v61, 9  ;;  %6245 = vst [vmem:[#allocation37_spill] sm:$0xff] %v5117_v38  ;;  %v835_v0 = vrot.slane %v398_v53, %v4923_v30  ;;  %v842_v6 = vrot.slane %v828_v34, %v4923_v30  ;;  %6249 = vst [vmem:[#allocation41_spill] sm:$0xff] %v5127_v55  ;;  %v413_v34 = vadd.f32 %v4965_v24, %v4921_v29 }
 0x179   : > { %6244 = vst [vmem:[#allocation36_spill] sm:$0xff] %v5115_v48  ;;  %v1405_v5 = vcombine.high %v1403_v43, %v1403_v43  ;;  %v4059_v36 = vrot.slane %v1403_v43, 9  ;;  %v4058_v52 = vrot.slane %v1404_v1, 9  ;;  %v5122_v17 = vmax.f32 %v1396_v4, %v4057_v54 }
 0x17a   : > { %v5120_v15 = vmax.f32 %v861_v61, %v3932_v2  ;;  %v843_v35 = vcombine.high %v835_v0, %v835_v0  ;;  %v3925_v47 = vrot.slane %v835_v0, 9  ;;  %v844_v60 = vcombine.high %v842_v6, %v842_v6 }
 0x17b   : > { %6247 = vst [vmem:[#allocation39_spill] sm:$0xff] %v5122_v17  ;;  %v4060_v31 = vrot.slane %v1405_v5, 9  ;;  %v5125_v10 = vmax.f32 %v1403_v43, %v4059_v36  ;;  %v5129_v62 = vmax.f32 %v1404_v1, %v4058_v52  ;;  %v3927_v40 = vrot.slane %v842_v6, 9 }
 0x17c   : > { %6246 = vst [vmem:[#allocation38_spill] sm:$0xff] %v5120_v15  ;;  %v558_v2 = vadd.f32 %v4921_v29, %v4952_v11  ;;  %v3926_v54 = vrot.slane %v843_v35, 9  ;;  %v5135_v53 = vmax.f32 %v835_v0, %v3925_v47  ;;  %v3928_v36 = vrot.slane %v844_v60, 9 }
 0x17d   : > { %6248 = vst [vmem:[#allocation40_spill] sm:$0xff] %v5125_v10  ;;  %6250 = vst [vmem:[#allocation42_spill] sm:$0xff] %v5129_v62  ;;  %v5133_v61 = vmax.f32 %v1405_v5, %v4060_v31  ;;  %v5139_v4 = vmax.f32 %v842_v6, %v3927_v40  ;;  %v879_v11 = vcombine.high %v413_v34, %v413_v34  ;;  %v5147_v5 = vpop.f32.mrb[18].mxu1 }
 0x17e   : > { %6252 = vst [vmem:[#allocation44_spill] sm:$0xff] %v5135_v53  ;;  %v1372_v43 = vcombine.high %v558_v2, %v558_v2  ;;  %v1379_v1 = vrot.slane %v558_v2, %v4923_v30  ;;  %v5142_v52 = vmax.f32 %v843_v35, %v3926_v54  ;;  %v886_v31 = vrot.slane %v413_v34, %v4923_v30 }
 0x17f   : > { %6251 = vst [vmem:[#allocation43_spill] sm:$0xff] %v5133_v61  ;;  %6253 = vst [vmem:[#allocation45_spill] sm:$0xff] %v5139_v4  ;;  %v5149_v0 = vmax.f32 %v844_v60, %v3928_v36  ;;  %v893_v2 = vrot.slane %v879_v11, %v4923_v30 }
 0x180   : > { %6254 = vst [vmem:[#allocation46_spill] sm:$0xff] %v5142_v52  ;;  %6255 = vst [vmem:[#allocation47_spill] sm:$0xff] %v5147_v5  ;;  %v1386_v40 = vrot.slane %v1372_v43, %v4923_v30  ;;  %v1387_v6 = vcombine.high %v1379_v1, %v1379_v1  ;;  %v4053_v47 = vrot.slane %v1379_v1, 9  ;;  %v894_v54 = vcombine.high %v886_v31, %v886_v31  ;;  %v5161_v43 = vpop.f32.mrb[19].mxu0 }
 0x181   : > { %6256 = vst [vmem:[#allocation48_spill] sm:$0xff] %v5149_v0  ;;  %v895_v56 = vcombine.high %v893_v2, %v893_v2  ;;  %v3937_v24 = vrot.slane %v886_v31, 9  ;;  %6258 = vst [vmem:[#allocation50_spill] sm:$0xff] %v5161_v43  ;;  %v3939_v11 = vrot.slane %v893_v2, 9 }
 0x182   : > { %v1388_v55 = vcombine.high %v1386_v40, %v1386_v40  ;;  %v4054_v5 = vrot.slane %v1387_v6, 9  ;;  %v4055_v60 = vrot.slane %v1386_v40, 9  ;;  %v5159_v36 = vmax.f32 %v1379_v1, %v4053_v47  ;;  %v5173_v1 = vpop.f32.mrb[19].mxu1 }
 0x183   : > { %v3938_v48 = vrot.slane %v894_v54, 9  ;;  %v3940_v34 = vrot.slane %v895_v56, 9  ;;  %v5169_v15 = vmax.f32 %v886_v31, %v3937_v24  ;;  %6262 = vst [vmem:[#allocation54_spill] sm:$0xff] %v5173_v1  ;;  %v573_v31 = vadd.f32 %v4967_v25, %v4921_v29 }
 0x184   : > { %6257 = vst [vmem:[#allocation49_spill] sm:$0xff] %v5159_v36  ;;  %v4056_v4 = vrot.slane %v1388_v55, 9  ;;  %v5163_v53 = vmax.f32 %v1387_v6, %v4054_v5  ;;  %v5165_v35 = vmax.f32 %v1386_v40, %v4055_v60  ;;  %v5181_v40 = vmax.f32 %v893_v2, %v3939_v11  ;;  %v5220_v36 = vpop.f32.mrb[20].mxu1 }
 0x185   : > { %v5171_v0 = vmax.f32 %v894_v54, %v3938_v48  ;;  %v5183_v6 = vmax.f32 %v895_v56, %v3940_v34  ;;  %v408_v48 = vadd.f32 %v4921_v29, %v4975_v32  ;;  %v423_v24 = vadd.f32 %v4994_v50, %v4921_v29  ;;  %6270 = vst [vmem:[#allocation62_spill] sm:$0xff] %v5220_v36 }
 0x186   : > { %6259 = vst [vmem:[#allocation51_spill] sm:$0xff] %v5163_v53  ;;  %6260 = vst [vmem:[#allocation52_spill] sm:$0xff] %v5165_v35  ;;  %v5175_v47 = vmax.f32 %v1388_v55, %v4056_v4  ;;  %v568_v55 = vadd.f32 %v4921_v29, %v4977_v33  ;;  %v5197_v2 = vadd.f32 %v4996_v51, %v4921_v29 }
 0x187   : > { %6261 = vst [vmem:[#allocation53_spill] sm:$0xff] %v5171_v0  ;;  %6264 = vst [vmem:[#allocation56_spill] sm:$0xff] %v5181_v40  ;;  %v5201_v56 = vadd.f32 %v4921_v29, %v5003_v57  ;;  %v1423_v25 = vcombine.high %v573_v31, %v573_v31  ;;  %v1430_v32 = vrot.slane %v573_v31, %v4923_v30  ;;  %v5209_v57 = vpop.f32.mrb[20].mxu0 }
 0x188   : > { %6263 = vst [vmem:[#allocation55_spill] sm:$0xff] %v5175_v47  ;;  %6265 = vst [vmem:[#allocation57_spill] sm:$0xff] %v5183_v6  ;;  %v862_v54 = vcombine.high %v408_v48, %v408_v48  ;;  %v869_v33 = vrot.slane %v408_v48, %v4923_v30  ;;  %v1406_v34 = vcombine.high %v568_v55, %v568_v55 }
 0x189   : > { %v1413_v60 = vrot.slane %v568_v55, %v4923_v30  ;;  %v913_v11 = vcombine.high %v423_v24, %v423_v24  ;;  %v920_v50 = vrot.slane %v423_v24, %v4923_v30  ;;  %v1437_v4 = vrot.slane %v1423_v25, %v4923_v30  ;;  %6266 = vst [vmem:[#allocation58_spill] sm:$0xff] %v5209_v57 }
 0x18a   : > { %v1438_v51 = vcombine.high %v1430_v32, %v1430_v32  ;;  %v4065_v5 = vrot.slane %v1430_v32, 9  ;;  %v876_v43 = vrot.slane %v862_v54, %v4923_v30  ;;  %v877_v38 = vcombine.high %v869_v33, %v869_v33 }
 0x18b   : > { %v3933_v1 = vrot.slane %v869_v33, 9  ;;  %v1420_v31 = vrot.slane %v1406_v34, %v4923_v30  ;;  %v1421_v61 = vcombine.high %v1413_v60, %v1413_v60  ;;  %v1439_v48 = vcombine.high %v1437_v4, %v1437_v4 }
 0x18c   : > { %v4066_v47 = vrot.slane %v1438_v51, 9  ;;  %v4067_v10 = vrot.slane %v1437_v4, 9  ;;  %v5212_v55 = vmax.f32 %v1430_v32, %v4065_v5  ;;  %v878_v35 = vcombine.high %v876_v43, %v876_v43 }
 0x18d   : > { %v3934_v24 = vrot.slane %v877_v38, 9  ;;  %v3935_v62 = vrot.slane %v876_v43, 9  ;;  %v5214_v25 = vmax.f32 %v869_v33, %v3933_v1  ;;  %v4068_v53 = vrot.slane %v1439_v48, 9 }
 0x18e   : > { %6267 = vst [vmem:[#allocation59_spill] sm:$0xff] %v5212_v55  ;;  %v5216_v17 = vmax.f32 %v1438_v51, %v4066_v47  ;;  %v5218_v54 = vmax.f32 %v1437_v4, %v4067_v10  ;;  %v1422_v57 = vcombine.high %v1420_v31, %v1420_v31  ;;  %v3936_v34 = vrot.slane %v878_v35, 9 }
 0x18f   : > { %v5222_v52 = vmax.f32 %v877_v38, %v3934_v24  ;;  %v5224_v41 = vmax.f32 %v876_v43, %v3935_v62  ;;  %v5228_v32 = vmax.f32 %v1439_v48, %v4068_v53  ;;  %v4061_v1 = vrot.slane %v1413_v60, 9  ;;  %v5243_v48 = vpop.f32.mrb[21].mxu0 }
 0x190   : > { %6268 = vst [vmem:[#allocation60_spill] sm:$0xff] %v5216_v17  ;;  %6269 = vst [vmem:[#allocation61_spill] sm:$0xff] %v5218_v54  ;;  %v4062_v33 = vrot.slane %v1421_v61, 9  ;;  %v4063_v18 = vrot.slane %v1420_v31, 9  ;;  %v5230_v47 = vmax.f32 %v878_v35, %v3936_v34  ;;  %v4064_v38 = vrot.slane %v1422_v57, 9 }
 0x191   : > { %6271 = vst [vmem:[#allocation63_spill] sm:$0xff] %v5222_v52  ;;  %6272 = vst [vmem:[#allocation64_spill] sm:$0xff] %v5228_v32  ;;  %v5236_v51 = vmax.f32 %v1413_v60, %v4061_v1  ;;  %v927_v53 = vrot.slane %v913_v11, %v4923_v30  ;;  %v928_v34 = vcombine.high %v920_v50, %v920_v50  ;;  %v3945_v10 = vrot.slane %v920_v50, 9  ;;  %v5255_v11 = vpop.f32.mrb[21].mxu1 }
 0x192   : > { %6273 = vst [vmem:[#allocation65_spill] sm:$0xff] %v5230_v47  ;;  %v5238_v62 = vmax.f32 %v1421_v61, %v4062_v33  ;;  %v5240_v43 = vmax.f32 %v1420_v31, %v4063_v18  ;;  %6277 = vst [vmem:[#allocation69_spill] sm:$0xff] %v5243_v48  ;;  %v5247_v24 = vmax.f32 %v1422_v57, %v4064_v38  ;;  %v5275_v40 = vpop.f32.mrb[22].mxu1 }
 0x193   : > { %6274 = vst [vmem:[#allocation66_spill] sm:$0xff] %v5236_v51  ;;  %v929_v60 = vcombine.high %v927_v53, %v927_v53  ;;  %6279 = vst [vmem:[#allocation71_spill] sm:$0xff] %v5255_v11  ;;  %v3946_v1 = vrot.slane %v928_v34, 9  ;;  %v3947_v57 = vrot.slane %v927_v53, 9  ;;  %v2908_v33 = vmax.f32 %v920_v50, %v3945_v10 }
 0x194   : > { %6275 = vst [vmem:[#allocation67_spill] sm:$0xff] %v5238_v62  ;;  %6276 = vst [vmem:[#allocation68_spill] sm:$0xff] %v5240_v43  ;;  %v1457_v35 = vcombine.high %v5197_v2, %v5197_v2  ;;  %v1464_v4 = vrot.slane %v5197_v2, %v4923_v30  ;;  %v896_v61 = vcombine.high %v5201_v56, %v5201_v56 }
 0x195   : > { %6278 = vst [vmem:[#allocation70_spill] sm:$0xff] %v5247_v24  ;;  %v3948_v38 = vrot.slane %v929_v60, 9  ;;  %v2909_v18 = vmax.f32 %v928_v34, %v3946_v1  ;;  %v2910_v5 = vmax.f32 %v927_v53, %v3947_v57  ;;  %v903_v11 = vrot.slane %v5201_v56, %v4923_v30 }
 0x196   : > { %v578_v31 = vadd.f32 %v4921_v29, %v5005_v58  ;;  %v1471_v50 = vrot.slane %v1457_v35, %v4923_v30  ;;  %v1472_v10 = vcombine.high %v1464_v4, %v1464_v4  ;;  %v4073_v36 = vrot.slane %v1464_v4, 9 }
 0x197   : > { %v2911_v48 = vmax.f32 %v929_v60, %v3948_v38  ;;  %v910_v32 = vrot.slane %v896_v61, %v4923_v30  ;;  %v911_v24 = vcombine.high %v903_v11, %v903_v11  ;;  %v3941_v2 = vrot.slane %v903_v11, 9 }
 0x198   : > { %v1440_v17 = vcombine.high %v578_v31, %v578_v31  ;;  %v1473_v62 = vcombine.high %v1471_v50, %v1471_v50  ;;  %v4074_v54 = vrot.slane %v1472_v10, 9  ;;  %v4075_v34 = vrot.slane %v1471_v50, 9 }
 0x199   : > { %v3036_v53 = vmax.f32 %v1464_v4, %v4073_v36  ;;  %v912_v1 = vcombine.high %v910_v32, %v910_v32  ;;  %v3942_v57 = vrot.slane %v911_v24, 9  ;;  %v3943_v56 = vrot.slane %v910_v32, 9  ;;  %v5273_v4 = vpop.f32.mrb[22].mxu0 }
 0x19a   : > { %v2904_v43 = vmax.f32 %v903_v11, %v3941_v2  ;;  %v4076_v6 = vrot.slane %v1473_v62, 9  ;;  %v3037_v58 = vmax.f32 %v1472_v10, %v4074_v54  ;;  %v3038_v60 = vmax.f32 %v1471_v50, %v4075_v34 }
 0x19b   : > { %v1447_v35 = vrot.slane %v578_v31, %v4923_v30  ;;  %v3944_v38 = vrot.slane %v912_v1, 9  ;;  %v2905_v47 = vmax.f32 %v911_v24, %v3942_v57  ;;  %v2906_v61 = vmax.f32 %v910_v32, %v3943_v56 }
 0x19c   : > { %v3144_v55 = vmax.f32 %v2904_v43, %v2908_v33  ;;  %v3039_v51 = vmax.f32 %v1473_v62, %v4076_v6  ;;  %v1454_v0 = vrot.slane %v1440_v17, %v4923_v30  ;;  %v6280_v31 = vmax.f32 %v4962_v21, %v4938_v63  ;;  %v5286_v63 = vpop.f32.mrb[23].mxu0 }
 0x19d   : > { %v1455_v52 = vcombine.high %v1447_v35, %v1447_v35  ;;  %v4069_v36 = vrot.slane %v1447_v35, 9  ;;  %v2907_v11 = vmax.f32 %v912_v1, %v3944_v38  ;;  %v3145_v54 = vmax.f32 %v2905_v47, %v2909_v18 }
 0x19e   : > { %v3146_v50 = vmax.f32 %v2906_v61, %v2910_v5  ;;  %v3256_v10 = vmax.f32 %v6280_v31, %v3144_v55  ;;  %v1456_v24 = vcombine.high %v1454_v0, %v1454_v0  ;;  %v4071_v43 = vrot.slane %v1454_v0, 9 }
 0x19f   : > { %v4070_v32 = vrot.slane %v1455_v52, 9  ;;  %v3032_v33 = vmax.f32 %v1447_v35, %v4069_v36  ;;  %v3147_v6 = vmax.f32 %v2907_v11, %v2911_v48  ;;  %v6281_v17 = vmax.f32 %v4969_v26, %v4946_v7 }
 0x1a0   : > { %v6282_v2 = vmax.f32 %v4971_v27, %v4948_v8  ;;  %v3320_v1 = vmax.f32 %v3256_v10, 0.0  ;;  %v4072_v47 = vrot.slane %v1456_v24, 9  ;;  %v3034_v18 = vmax.f32 %v1454_v0, %v4071_v43 }
 0x1a1   : > { %v3257_v62 = vmax.f32 %v6281_v17, %v3145_v54  ;;  %v3033_v5 = vmax.f32 %v1455_v52, %v4070_v32  ;;  %v3208_v57 = vmax.f32 %v3032_v33, %v3036_v53  ;;  %v6283_v21 = vmax.f32 %v4973_v28, %v4958_v16 }
 0x1a2   : > { %v3258_v34 = vmax.f32 %v6282_v2, %v3146_v50  ;;  %v3451_v7 = vrot.slane %v3320_v1, %v4929_v39  ;;  %v3035_v26 = vmax.f32 %v1456_v24, %v4072_v47  ;;  %v3210_v38 = vmax.f32 %v3034_v18, %v3038_v60 }
 0x1a3   : > { %v3259_v55 = vmax.f32 %v6283_v21, %v3147_v6  ;;  %v3321_v48 = vmax.f32 %v3257_v62, 0.0  ;;  %v3209_v35 = vmax.f32 %v3033_v5, %v3037_v58  ;;  %v6284_v8 = vmax.f32 %v4987_v42, %v4940_v3  ;;  %v5305_v42 = vpop.f32.mrb[23].mxu1  ;;  %v5320_v62 = vpop.f32.mrb[24].mxu0 }
 0x1a4   : > { %v3322_v56 = vmax.f32 %v3258_v34, 0.0  ;;  %v433_v16 = vadd.f32 %v5019_v9, %v4921_v29  ;;  %v3211_v28 = vmax.f32 %v3035_v26, %v3039_v51  ;;  %v6285_v61 = vmax.f32 %v4989_v44, %v4954_v13 }
 0x1a5   : > { %v3288_v27 = vmax.f32 %v6284_v8, %v3208_v57  ;;  %v3323_v52 = vmax.f32 %v3259_v55, 0.0  ;;  %v3455_v0 = vrot.slane %v3321_v48, %v4929_v39  ;;  %v6286_v58 = vmax.f32 %v4991_v45, %v4956_v14 }
 0x1a6   : > { %v3459_v53 = vrot.slane %v3322_v56, %v4929_v39  ;;  %v3289_v36 = vmax.f32 %v6285_v61, %v3209_v35  ;;  %v947_v50 = vcombine.high %v433_v16, %v433_v16  ;;  %v954_v31 = vrot.slane %v433_v16, %v4923_v30  ;;  %v5335_v35 = vpop.f32.mrb[24].mxu1 }
 0x1a7   : > { %v3290_v60 = vmax.f32 %v6286_v58, %v3210_v38  ;;  %v3352_v3 = vmax.f32 %v3288_v27, 0.0  ;;  %v3463_v11 = vrot.slane %v3323_v52, %v4929_v39  ;;  %v3705_v54 = vsel %vm3704_vm0, %v3455_v0, %v3451_v7 }
 0x1a8   : > { %v3707_v9 = vsel %vm3706_vm1, %v3459_v53, %v3705_v54  ;;  %v6287_v13 = vmax.f32 %v5007_v59, %v4960_v20  ;;  %v3353_v51 = vmax.f32 %v3289_v36, 0.0  ;;  %v961_v45 = vrot.slane %v947_v50, %v4923_v30  ;;  %v6288_v54 = vld [vmem:[#allocation12_spill] sm:$0xff] }
 0x1a9   : > { %v3354_v10 = vmax.f32 %v3290_v60, 0.0  ;;  %v3579_v14 = vrot.slane %v3352_v3, %v4929_v39  ;;  %v962_v24 = vcombine.high %v954_v31, %v954_v31  ;;  %v3953_v32 = vrot.slane %v954_v31, 9 }
 0x1aa   : > { %v3291_v44 = vmax.f32 %v6287_v13, %v3211_v28  ;;  %v3583_v33 = vrot.slane %v3353_v51, %v4929_v39  ;;  %v593_v17 = vadd.f32 %v5021_v12, %v4921_v29  ;;  %v963_v20 = vcombine.high %v961_v45, %v961_v45 }
 0x1ab   : > { %v3587_v6 = vrot.slane %v3354_v10, %v4929_v39  ;;  %v3954_v59 = vrot.slane %v962_v24, 9  ;;  %v3955_v2 = vrot.slane %v961_v45, 9  ;;  %v5322_v34 = vmax.f32 %v954_v31, %v3953_v32 }
 0x1ac   : > { %v3355_v43 = vmax.f32 %v3291_v44, 0.0  ;;  %v3739_v47 = vsel %vm3704_vm0, %v3583_v33, %v3579_v14  ;;  %v1491_v5 = vcombine.high %v593_v17, %v593_v17  ;;  %v1498_v18 = vrot.slane %v593_v17, %v4923_v30 }
 0x1ad   : > { %v3740_v57 = vsel %vm3706_vm1, %v3587_v6, %v3739_v47  ;;  %v3956_v21 = vrot.slane %v963_v20, 9  ;;  %v5328_v55 = vmax.f32 %v962_v24, %v3954_v59  ;;  %v5330_v12 = vmax.f32 %v961_v45, %v3955_v2  ;;  %v5357_v45 = vpop.f32.mrb[25].mxu0  ;;  %v5359_v24 = vpop.f32.mrb[25].mxu1 }
 0x1ae   : > { %v3591_v1 = vrot.slane %v3355_v43, %v4929_v39  ;;  %v1505_v48 = vrot.slane %v1491_v5, %v4923_v30  ;;  %v1506_v56 = vcombine.high %v1498_v18, %v1498_v18  ;;  %v4081_v7 = vrot.slane %v1498_v18, 9 }
 0x1af   : > { %v428_v26 = vadd.f32 %v4921_v29, %v5024_v22  ;;  %v5337_v38 = vmax.f32 %v963_v20, %v3956_v21  ;;  %v5340_v8 = vsel %vm3708_vm2, %v3463_v11, %v3707_v9  ;;  %v588_v27 = vadd.f32 %v4921_v29, %v5026_v23 }
 0x1b0   : > { %v5345_v52 = vsel %vm3708_vm2, %v3591_v1, %v3740_v57  ;;  %v1507_v0 = vcombine.high %v1505_v48, %v1505_v48  ;;  %v4082_v53 = vrot.slane %v1506_v56, 9  ;;  %v4083_v16 = vrot.slane %v1505_v48, 9 }
 0x1b1   : > { %v3044_v28 = vmax.f32 %v1498_v18, %v4081_v7  ;;  %v930_v61 = vcombine.high %v428_v26, %v428_v26  ;;  %v937_v22 = vrot.slane %v428_v26, %v4923_v30  ;;  %v1474_v36 = vcombine.high %v588_v27, %v588_v27 }
 0x1b2   : > { %v1481_v58 = vrot.slane %v588_v27, %v4923_v30  ;;  %v4084_v60 = vrot.slane %v1507_v0, 9  ;;  %v3045_v3 = vmax.f32 %v1506_v56, %v4082_v53  ;;  %v3046_v11 = vmax.f32 %v1505_v48, %v4083_v16 }
 0x1b3   : > { %v5351_v50 = vadd.f32 %v6288_v54, %v4921_v29  ;;  %v944_v23 = vrot.slane %v930_v61, %v4923_v30  ;;  %v945_v31 = vcombine.high %v937_v22, %v937_v22  ;;  %v3949_v9 = vrot.slane %v937_v22, 9 }
 0x1b4   : > { %v1488_v13 = vrot.slane %v1474_v36, %v4923_v30  ;;  %v3047_v44 = vmax.f32 %v1507_v0, %v4084_v60  ;;  %v1489_v51 = vcombine.high %v1481_v58, %v1481_v58  ;;  %v4077_v10 = vrot.slane %v1481_v58, 9  ;;  %v6292_v60 = vld [vmem:[#allocation14_spill] sm:$0xff] }
 0x1b5   : > { %v981_v14 = vcombine.high %v5351_v50, %v5351_v50  ;;  %v946_v32 = vcombine.high %v944_v23, %v944_v23  ;;  %v3950_v43 = vrot.slane %v945_v31, 9  ;;  %v3951_v33 = vrot.slane %v944_v23, 9 }
 0x1b6   : > { %v2912_v6 = vmax.f32 %v937_v22, %v3949_v9  ;;  %v1490_v17 = vcombine.high %v1488_v13, %v1488_v13  ;;  %v4078_v20 = vrot.slane %v1489_v51, 9  ;;  %v4079_v59 = vrot.slane %v1488_v13, 9 }
 0x1b7   : > { %v3040_v2 = vmax.f32 %v1481_v58, %v4077_v10  ;;  %v3952_v1 = vrot.slane %v946_v32, 9  ;;  %v2913_v47 = vmax.f32 %v945_v31, %v3950_v43  ;;  %v2914_v5 = vmax.f32 %v944_v23, %v3951_v33  ;;  %v6294_v23 = vld [vmem:[#allocation24_spill] sm:$0xff]  ;;  %v6303_v33 = vld [vmem:[#allocation27_spill] sm:$0xff] }
 0x1b8   : > { %v3148_v18 = vmax.f32 %v2912_v6, %v5322_v34  ;;  %v4080_v57 = vrot.slane %v1490_v17, 9  ;;  %v3041_v21 = vmax.f32 %v1489_v51, %v4078_v20  ;;  %v3042_v48 = vmax.f32 %v1488_v13, %v4079_v59  ;;  %v6297_v13 = vld [vmem:[#allocation31_spill] sm:$0xff]  ;;  %v6300_v10 = vld [vmem:[#allocation28_spill] sm:$0xff]  ;;  %v6304_v6 = vld [vmem:[#allocation18_spill] sm:$0xff] }
 0x1b9   : > { %v3212_v56 = vmax.f32 %v3040_v2, %v3044_v28  ;;  %v2915_v7 = vmax.f32 %v946_v32, %v3952_v1  ;;  %v3149_v26 = vmax.f32 %v2913_v47, %v5328_v55  ;;  %v3150_v27 = vmax.f32 %v2914_v5, %v5330_v12  ;;  %v6291_v28 = vld [vmem:[#allocation23_spill] sm:$0xff]  ;;  %v6307_v47 = vld [vmem:[#allocation20_spill] sm:$0xff] }
 0x1ba   : > { %v6289_v0 = vmax.f32 %v5054_v19, %v5029_v46  ;;  %v3043_v16 = vmax.f32 %v1490_v17, %v4080_v57  ;;  %v3213_v61 = vmax.f32 %v3041_v21, %v3045_v3  ;;  %v3214_v22 = vmax.f32 %v3042_v48, %v3046_v11  ;;  %v6295_v12 = vld [vmem:[#allocation11_spill] sm:$0xff] }
 0x1bb   : > { %v6290_v34 = vmax.f32 %v5079_v37, %v5033_v49  ;;  %v3151_v58 = vmax.f32 %v2915_v7, %v5337_v38  ;;  %v6293_v54 = vmax.f32 %v6291_v28, %v6292_v60  ;;  %v6296_v31 = vmax.f32 %v6294_v23, %v6295_v12  ;;  %v6298_v3 = vld [vmem:[#allocation15_spill] sm:$0xff]  ;;  %v5383_v38 = vpop.f32.mrb[26].mxu0 }
 0x1bc   : > { %v3260_v53 = vmax.f32 %v6289_v0, %v3148_v18  ;;  %v3215_v19 = vmax.f32 %v3043_v16, %v3047_v44  ;;  %v6299_v51 = vmax.f32 %v6297_v13, %v6298_v3  ;;  %v6301_v32 = vld [vmem:[#allocation19_spill] sm:$0xff]  ;;  %v6305_v17 = vmax.f32 %v6303_v33, %v6304_v6  ;;  %v6306_v44 = vld [vmem:[#allocation33_spill] sm:$0xff] }
 0x1bd   : > { %v3292_v36 = vmax.f32 %v6290_v34, %v3212_v56  ;;  %v3261_v55 = vmax.f32 %v6293_v54, %v3149_v26  ;;  %v3262_v9 = vmax.f32 %v6296_v31, %v3150_v27  ;;  %v6302_v49 = vmax.f32 %v6300_v10, %v6301_v32  ;;  %v6309_v54 = vld [vmem:[#allocation13_spill] sm:$0xff] }
 0x1be   : > { %v3324_v46 = vmax.f32 %v3260_v53, 0.0  ;;  %v3293_v11 = vmax.f32 %v6299_v51, %v3213_v61  ;;  %v3263_v20 = vmax.f32 %v6305_v17, %v3151_v58  ;;  %v6308_v5 = vmax.f32 %v6306_v44, %v6307_v47  ;;  %v5425_v51 = vld [vmem:[%s6115_s2] ss:$0 sm:$0xff] }
 0x1bf   : > { %v3294_v37 = vmax.f32 %v6302_v49, %v3214_v22  ;;  %v3356_v43 = vmax.f32 %v3292_v36, 0.0  ;;  %v3325_v59 = vmax.f32 %v3261_v55, 0.0  ;;  %v3326_v2 = vmax.f32 %v3262_v9, 0.0 }
 0x1c0   : > { %v3467_v1 = vrot.slane %v3324_v46, %v4929_v39  ;;  %v3295_v18 = vmax.f32 %v6308_v5, %v3215_v19  ;;  %v3357_v57 = vmax.f32 %v3293_v11, 0.0  ;;  %v3327_v56 = vmax.f32 %v3263_v20, 0.0  ;;  %v5418_v19 = vpop.f32.mrb[26].mxu1  ;;  %v6310_v11 = vld [vmem:[#allocation16_spill] sm:$0xff] }
 0x1c1   : > { %v3358_v21 = vmax.f32 %v3294_v37, 0.0  ;;  %v3595_v48 = vrot.slane %v3356_v43, %v4929_v39  ;;  %v3471_v7 = vrot.slane %v3325_v59, %v4929_v39  ;;  %v3475_v26 = vrot.slane %v3326_v2, %v4929_v39  ;;  %v6311_v43 = vld [vmem:[#allocation17_spill] sm:$0xff] }
 0x1c2   : > { %v3711_v27 = vsel %vm3710_vm3, %v3467_v1, %v5340_v8  ;;  %v3359_v0 = vmax.f32 %v3295_v18, 0.0  ;;  %v3599_v53 = vrot.slane %v3357_v57, %v4929_v39  ;;  %v3479_v22 = vrot.slane %v3327_v56, %v4929_v39 }
 0x1c3   : > { %v3603_v16 = vrot.slane %v3358_v21, %v4929_v39  ;;  %v3742_v61 = vsel %vm3710_vm3, %v3595_v48, %v5345_v52  ;;  %v3713_v34 = vsel %vm3712_vm4, %v3471_v7, %v3711_v27  ;;  %v988_v36 = vrot.slane %v5351_v50, %v4923_v30  ;;  %v5435_v27 = vpop.f32.mrb[27].mxu0 }
 0x1c4   : > { %v995_v58 = vrot.slane %v981_v14, %v4923_v30  ;;  %v3715_v28 = vsel %vm3714_vm5, %v3475_v26, %v3713_v34  ;;  %v3607_v8 = vrot.slane %v3359_v0, %v4929_v39  ;;  %v3743_v60 = vsel %vm3712_vm4, %v3599_v53, %v3742_v61 }
 0x1c5   : > { %v603_v55 = vadd.f32 %v6309_v54, %v4921_v29  ;;  %v3717_v52 = vsel %vm3716_vm6, %v3479_v22, %v3715_v28  ;;  %v3744_v23 = vsel %vm3714_vm5, %v3603_v16, %v3743_v60  ;;  %v996_v12 = vcombine.high %v988_v36, %v988_v36  ;;  %v5438_v28 = vpop.f32.mrb[27].mxu1 }
 0x1c6   : > { %v997_v31 = vcombine.high %v995_v58, %v995_v58  ;;  %3775 = vst [vmem:[%s5414_s10] sm:$0xff] %v3717_v52  ;;  %v3745_v50 = vsel %vm3716_vm6, %v3607_v8, %v3744_v23  ;;  %v3961_v14 = vrot.slane %v988_v36, 9  ;;  %v3963_v9 = vrot.slane %v995_v58, 9 }
 0x1c7   : > { %v1525_v46 = vcombine.high %v603_v55, %v603_v55  ;;  %3779 = vst [vmem:[%s5414_s10 + $0x20] sm:$0xff] %v3745_v50  ;;  %v3962_v29 = vrot.slane %v996_v12, 9  ;;  %v1532_v3 = vrot.slane %v603_v55, %v4923_v30  ;;  %v438_v10 = vadd.f32 %v5425_v51, %v6310_v11 }
 0x1c8   : > { %v3964_v13 = vrot.slane %v997_v31, 9  ;;  %v2924_v32 = vmax.f32 %v988_v36, %v3961_v14  ;;  %v2926_v49 = vmax.f32 %v995_v58, %v3963_v9  ;;  %v598_v33 = vadd.f32 %v5425_v51, %v6311_v43 }
 0x1c9   : > { %v1539_v37 = vrot.slane %v1525_v46, %v4923_v30  ;;  %v2925_v6 = vmax.f32 %v996_v12, %v3962_v29  ;;  %v1540_v20 = vcombine.high %v1532_v3, %v1532_v3  ;;  %v4089_v59 = vrot.slane %v1532_v3, 9 }
 0x1ca   : > { %v2927_v17 = vmax.f32 %v997_v31, %v3964_v13  ;;  %v964_v44 = vcombine.high %v438_v10, %v438_v10  ;;  %v971_v47 = vrot.slane %v438_v10, %v4923_v30  ;;  %v1508_v57 = vcombine.high %v598_v33, %v598_v33  ;;  %v6312_v10 = vld [vmem:[#allocation44_spill] sm:$0xff] }
 0x1cb   : > { %v1541_v2 = vcombine.high %v1539_v37, %v1539_v37  ;;  %v4091_v1 = vrot.slane %v1539_v37, 9  ;;  %v4090_v5 = vrot.slane %v1540_v20, 9  ;;  %v3052_v18 = vmax.f32 %v1532_v3, %v4089_v59 }
 0x1cc   : > { %v1515_v21 = vrot.slane %v598_v33, %v4923_v30  ;;  %v978_v7 = vrot.slane %v964_v44, %v4923_v30  ;;  %v979_v26 = vcombine.high %v971_v47, %v971_v47  ;;  %v3957_v53 = vrot.slane %v971_v47, 9  ;;  %v6315_v44 = vld [vmem:[#allocation46_spill] sm:$0xff] }
 0x1cd   : > { %v4092_v48 = vrot.slane %v1541_v2, 9  ;;  %v3054_v56 = vmax.f32 %v1539_v37, %v4091_v1  ;;  %v3053_v0 = vmax.f32 %v1540_v20, %v4090_v5  ;;  %v1522_v16 = vrot.slane %v1508_v57, %v4923_v30  ;;  %v6313_v37 = vld [vmem:[#allocation34_spill] sm:$0xff] }
 0x1ce   : > { %v1523_v61 = vcombine.high %v1515_v21, %v1515_v21  ;;  %v980_v34 = vcombine.high %v978_v7, %v978_v7  ;;  %v3958_v36 = vrot.slane %v979_v26, 9  ;;  %v3959_v58 = vrot.slane %v978_v7, 9 }
 0x1cf   : > { %v3055_v22 = vmax.f32 %v1541_v2, %v4092_v48  ;;  %v2920_v8 = vmax.f32 %v971_v47, %v3957_v53  ;;  %v1524_v60 = vcombine.high %v1522_v16, %v1522_v16  ;;  %v4085_v54 = vrot.slane %v1515_v21, 9  ;;  %v6316_v47 = vld [vmem:[#allocation37_spill] sm:$0xff]  ;;  %v6319_v48 = vld [vmem:[#allocation36_spill] sm:$0xff] }
 0x1d0   : > { %v4086_v55 = vrot.slane %v1523_v61, 9  ;;  %v3960_v52 = vrot.slane %v980_v34, 9  ;;  %v2921_v23 = vmax.f32 %v979_v26, %v3958_v36  ;;  %v2922_v12 = vmax.f32 %v978_v7, %v3959_v58 }
 0x1d1   : > { %v4087_v31 = vrot.slane %v1522_v16, 9  ;;  %v3152_v50 = vmax.f32 %v2920_v8, %v2924_v32  ;;  %v4088_v14 = vrot.slane %v1524_v60, 9  ;;  %v3048_v9 = vmax.f32 %v1515_v21, %v4085_v54  ;;  %v6318_v32 = vld [vmem:[#allocation45_spill] sm:$0xff]  ;;  %v6328_v8 = vld [vmem:[#allocation48_spill] sm:$0xff] }
 0x1d2   : > { %v3049_v46 = vmax.f32 %v1523_v61, %v4086_v55  ;;  %v2923_v29 = vmax.f32 %v980_v34, %v3960_v52  ;;  %v3153_v13 = vmax.f32 %v2921_v23, %v2925_v6  ;;  %v3154_v3 = vmax.f32 %v2922_v12, %v2926_v49  ;;  %v5449_v6 = vpop.f32.mrb[28].mxu0  ;;  %v6323_v61 = vld [vmem:[#allocation39_spill] sm:$0xff]  ;;  %v6331_v12 = vld [vmem:[#allocation52_spill] sm:$0xff] }
 0x1d3   : > { %v3050_v11 = vmax.f32 %v1522_v16, %v4087_v31  ;;  %v6314_v43 = vmax.f32 %v6312_v10, %v6313_v37  ;;  %v3051_v20 = vmax.f32 %v1524_v60, %v4088_v14  ;;  %v3216_v59 = vmax.f32 %v3048_v9, %v3052_v18  ;;  %6321 = vst [vmem:[#allocation12_spill] sm:$0xff] %v5449_v6  ;;  %v6322_v16 = vld [vmem:[#allocation49_spill] sm:$0xff]  ;;  %v6325_v18 = vld [vmem:[#allocation51_spill] sm:$0xff]  ;;  %v6329_v60 = vld [vmem:[#allocation38_spill] sm:$0xff] }
 0x1d4   : > { %v3217_v2 = vmax.f32 %v3049_v46, %v3053_v0  ;;  %v3155_v1 = vmax.f32 %v2923_v29, %v2927_v17  ;;  %v6317_v5 = vmax.f32 %v6315_v44, %v6316_v47  ;;  %v6320_v21 = vmax.f32 %v6318_v32, %v6319_v48  ;;  %v6326_v0 = vld [vmem:[#allocation42_spill] sm:$0xff]  ;;  %v6334_v14 = vld [vmem:[#allocation55_spill] sm:$0xff] }
 0x1d5   : > { %v3264_v33 = vmax.f32 %v6314_v43, %v3152_v50  ;;  %v3218_v26 = vmax.f32 %v3050_v11, %v3054_v56  ;;  %v3219_v53 = vmax.f32 %v3051_v20, %v3055_v22  ;;  %v6324_v34 = vmax.f32 %v6322_v16, %v6323_v61  ;;  %v6332_v56 = vld [vmem:[#allocation40_spill] sm:$0xff]  ;;  %v6335_v9 = vld [vmem:[#allocation43_spill] sm:$0xff] }
 0x1d6   : > { %v3265_v57 = vmax.f32 %v6317_v5, %v3153_v13  ;;  %v3266_v7 = vmax.f32 %v6320_v21, %v3154_v3  ;;  %v6327_v17 = vmax.f32 %v6325_v18, %v6326_v0  ;;  %v6330_v54 = vmax.f32 %v6328_v8, %v6329_v60 }
 0x1d7   : > { %v3328_v49 = vmax.f32 %v3264_v33, 0.0  ;;  %v3296_v36 = vmax.f32 %v6324_v34, %v3216_v59  ;;  %v6333_v31 = vmax.f32 %v6331_v12, %v6332_v56  ;;  %v6336_v46 = vmax.f32 %v6334_v14, %v6335_v9  ;;  %v5493_v9 = vpop.f32.mrb[28].mxu1 }
 0x1d8   : > { %v3297_v58 = vmax.f32 %v6327_v17, %v3217_v2  ;;  %v3267_v55 = vmax.f32 %v6330_v54, %v3155_v1  ;;  %v3329_v52 = vmax.f32 %v3265_v57, 0.0  ;;  %v3330_v23 = vmax.f32 %v3266_v7, 0.0  ;;  %v6337_v2 = vld [vmem:[#allocation21_spill] sm:$0xff]  ;;  %v6338_v57 = vld [vmem:[#allocation22_spill] sm:$0xff]  ;;  %6341 = vst [vmem:[#allocation23_spill] sm:$0xff] %v5493_v9 }
 0x1d9   : > { %v3298_v50 = vmax.f32 %v6333_v31, %v3218_v26  ;;  %v3483_v22 = vrot.slane %v3328_v49, %v4929_v39  ;;  %v3299_v29 = vmax.f32 %v6336_v46, %v3219_v53  ;;  %v3360_v13 = vmax.f32 %v3296_v36, 0.0  ;;  %v6339_v36 = vld [vmem:[#allocation25_spill] sm:$0xff]  ;;  %v6340_v17 = vld [vmem:[#allocation26_spill] sm:$0xff] }
 0x1da   : > { %v3361_v3 = vmax.f32 %v3297_v58, 0.0  ;;  %v3331_v11 = vmax.f32 %v3267_v55, 0.0  ;;  %v3487_v10 = vrot.slane %v3329_v52, %v4929_v39  ;;  %v3491_v37 = vrot.slane %v3330_v23, %v4929_v39 }
 0x1db   : > { %v3362_v43 = vmax.f32 %v3298_v50, 0.0  ;;  %v3363_v33 = vmax.f32 %v3299_v29, 0.0  ;;  %v3611_v20 = vrot.slane %v3360_v13, %v4929_v39  ;;  %v453_v1 = vadd.f32 %v5425_v51, %v6337_v2 }
 0x1dc   : > { %v3615_v59 = vrot.slane %v3361_v3, %v4929_v39  ;;  %v3495_v44 = vrot.slane %v3331_v11, %v4929_v39  ;;  %v3718_v47 = vsel %vm3704_vm0, %v3487_v10, %v3483_v22  ;;  %v613_v32 = vadd.f32 %v5425_v51, %v6338_v57 }
 0x1dd   : > { %v3619_v5 = vrot.slane %v3362_v43, %v4929_v39  ;;  %v3719_v48 = vsel %vm3706_vm1, %v3491_v37, %v3718_v47  ;;  %v3623_v21 = vrot.slane %v3363_v33, %v4929_v39  ;;  %v1015_v26 = vcombine.high %v453_v1, %v453_v1  ;;  %v5496_v33 = vpop.f32.mrb[29].mxu0 }
 0x1de   : > { %v3746_v7 = vsel %vm3704_vm0, %v3615_v59, %v3611_v20  ;;  %v1022_v53 = vrot.slane %v453_v1, %v4923_v30  ;;  %v1559_v16 = vcombine.high %v613_v32, %v613_v32  ;;  %v1566_v61 = vrot.slane %v613_v32, %v4923_v30  ;;  %6342 = vst [vmem:[#allocation14_spill] sm:$0xff] %v5496_v33 }
 0x1df   : > { %v3747_v49 = vsel %vm3706_vm1, %v3619_v5, %v3746_v7  ;;  %v1029_v34 = vrot.slane %v1015_v26, %v4923_v30  ;;  %v448_v18 = vadd.f32 %v5425_v51, %v6339_v36  ;;  %v5488_v0 = vsel %vm3708_vm2, %v3495_v44, %v3719_v48  ;;  %v5502_v36 = vpop.f32.mrb[29].mxu1 }
 0x1e0   : > { %v608_v58 = vadd.f32 %v5425_v51, %v6340_v17  ;;  %v1030_v8 = vcombine.high %v1022_v53, %v1022_v53  ;;  %v3969_v60 = vrot.slane %v1022_v53, 9  ;;  %v1573_v54 = vrot.slane %v1559_v16, %v4923_v30  ;;  %6343 = vst [vmem:[#allocation24_spill] sm:$0xff] %v5502_v36 }
 0x1e1   : > { %v1574_v55 = vcombine.high %v1566_v61, %v1566_v61  ;;  %v1031_v52 = vcombine.high %v1029_v34, %v1029_v34  ;;  %v3971_v23 = vrot.slane %v1029_v34, 9  ;;  %v4097_v12 = vrot.slane %v1566_v61, 9 }
 0x1e2   : > { %v998_v56 = vcombine.high %v448_v18, %v448_v18  ;;  %v3970_v31 = vrot.slane %v1030_v8, 9  ;;  %v2932_v50 = vmax.f32 %v1022_v53, %v3969_v60  ;;  %v1575_v22 = vcombine.high %v1573_v54, %v1573_v54 }
 0x1e3   : > { %v4098_v14 = vrot.slane %v1574_v55, 9  ;;  %v3972_v46 = vrot.slane %v1031_v52, 9  ;;  %v2934_v29 = vmax.f32 %v1029_v34, %v3971_v23  ;;  %v4099_v13 = vrot.slane %v1573_v54, 9 }
 0x1e4   : > { %v3060_v3 = vmax.f32 %v1566_v61, %v4097_v12  ;;  %v2933_v11 = vmax.f32 %v1030_v8, %v3970_v31  ;;  %v4100_v10 = vrot.slane %v1575_v22, 9  ;;  %v1005_v43 = vrot.slane %v448_v18, %v4923_v30 }
 0x1e5   : > { %v3061_v37 = vmax.f32 %v1574_v55, %v4098_v14  ;;  %v2935_v20 = vmax.f32 %v1031_v52, %v3972_v46  ;;  %v3062_v59 = vmax.f32 %v1573_v54, %v4099_v13  ;;  %v1012_v2 = vrot.slane %v998_v56, %v4923_v30 }
 0x1e6   : > { %v1542_v1 = vcombine.high %v608_v58, %v608_v58  ;;  %v3063_v44 = vmax.f32 %v1575_v22, %v4100_v10  ;;  %v1013_v47 = vcombine.high %v1005_v43, %v1005_v43  ;;  %v3965_v5 = vrot.slane %v1005_v43, 9  ;;  %v6345_v10 = vld [vmem:[#allocation56_spill] sm:$0xff] }
 0x1e7   : > { %v1549_v57 = vrot.slane %v608_v58, %v4923_v30  ;;  %v1014_v32 = vcombine.high %v1012_v2, %v1012_v2  ;;  %v3967_v48 = vrot.slane %v1012_v2, 9  ;;  %v3748_v26 = vsel %vm3708_vm2, %v3623_v21, %v3747_v49 }
 0x1e8   : > { %v1556_v7 = vrot.slane %v1542_v1, %v4923_v30  ;;  %v3966_v53 = vrot.slane %v1013_v47, 9  ;;  %v2928_v16 = vmax.f32 %v1005_v43, %v3965_v5  ;;  %v6344_v21 = vmax.f32 %v5214_v25, %v5169_v15  ;;  %v6348_v5 = vld [vmem:[#allocation53_spill] sm:$0xff] }
 0x1e9   : > { %v1557_v61 = vcombine.high %v1549_v57, %v1549_v57  ;;  %v4093_v34 = vrot.slane %v1549_v57, 9  ;;  %v3968_v18 = vrot.slane %v1014_v32, 9  ;;  %v2930_v17 = vmax.f32 %v1012_v2, %v3967_v48  ;;  %v6353_v25 = vld [vmem:[#allocation65_spill] sm:$0xff] }
 0x1ea   : > { %v1558_v8 = vcombine.high %v1556_v7, %v1556_v7  ;;  %v4095_v60 = vrot.slane %v1556_v7, 9  ;;  %v2929_v54 = vmax.f32 %v1013_v47, %v3966_v53  ;;  %v3156_v55 = vmax.f32 %v2928_v16, %v2932_v50  ;;  %v6347_v47 = vld [vmem:[#allocation63_spill] sm:$0xff]  ;;  %v6354_v16 = vld [vmem:[#allocation57_spill] sm:$0xff] }
 0x1eb   : > { %v4094_v52 = vrot.slane %v1557_v61, 9  ;;  %v3056_v58 = vmax.f32 %v1549_v57, %v4093_v34  ;;  %v2931_v23 = vmax.f32 %v1014_v32, %v3968_v18  ;;  %v3158_v12 = vmax.f32 %v2930_v17, %v2934_v29  ;;  %v6357_v18 = vld [vmem:[#allocation61_spill] sm:$0xff] }
 0x1ec   : > { %v4096_v56 = vrot.slane %v1558_v8, 9  ;;  %v3058_v31 = vmax.f32 %v1556_v7, %v4095_v60  ;;  %v3157_v22 = vmax.f32 %v2929_v54, %v2933_v11  ;;  %v3268_v49 = vmax.f32 %v6344_v21, %v3156_v55  ;;  %v6350_v11 = vld [vmem:[#allocation66_spill] sm:$0xff]  ;;  %v6351_v7 = vld [vmem:[#allocation59_spill] sm:$0xff]  ;;  %v6360_v55 = vld [vmem:[#allocation60_spill] sm:$0xff] }
 0x1ed   : > { %v3057_v14 = vmax.f32 %v1557_v61, %v4094_v52  ;;  %v3220_v46 = vmax.f32 %v3056_v58, %v3060_v3  ;;  %v3159_v13 = vmax.f32 %v2931_v23, %v2935_v20  ;;  %v6346_v43 = vmax.f32 %v5224_v41, %v6345_v10  ;;  %v6356_v41 = vld [vmem:[#allocation68_spill] sm:$0xff]  ;;  %v6359_v54 = vld [vmem:[#allocation67_spill] sm:$0xff]  ;;  %v5526_v23 = vpop.f32.mrb[30].mxu0 }
 0x1ee   : > { %v3059_v1 = vmax.f32 %v1558_v8, %v4096_v56  ;;  %v3222_v50 = vmax.f32 %v3058_v31, %v3062_v59  ;;  %v6349_v57 = vmax.f32 %v6347_v47, %v6348_v5  ;;  %v3332_v32 = vmax.f32 %v3268_v49, 0.0  ;;  %6362 = vst [vmem:[#allocation11_spill] sm:$0xff] %v5526_v23  ;;  %v6363_v31 = vld [vmem:[#allocation70_spill] sm:$0xff] }
 0x1ef   : > { %v3270_v2 = vmax.f32 %v6346_v43, %v3158_v12  ;;  %v3221_v48 = vmax.f32 %v3057_v14, %v3061_v37  ;;  %v6352_v53 = vmax.f32 %v6350_v11, %v6351_v7  ;;  %v6355_v3 = vmax.f32 %v6353_v25, %v6354_v16 }
 0x1f0   : > { %v3269_v29 = vmax.f32 %v6349_v57, %v3157_v22  ;;  %v3223_v34 = vmax.f32 %v3059_v1, %v3063_v44  ;;  %v6358_v17 = vmax.f32 %v6356_v41, %v6357_v18  ;;  %v3499_v60 = vrot.slane %v3332_v32, %v4929_v39  ;;  %v6364_v22 = vld [vmem:[#allocation64_spill] sm:$0xff]  ;;  %v6367_v32 = vld [vmem:[#allocation30_spill] sm:$0xff]  ;;  %v5554_v41 = vpop.f32.mrb[30].mxu1 }
 0x1f1   : > { %v3300_v15 = vmax.f32 %v6352_v53, %v3220_v46  ;;  %v3271_v20 = vmax.f32 %v6355_v3, %v3159_v13  ;;  %v3334_v61 = vmax.f32 %v3270_v2, 0.0  ;;  %v6361_v37 = vmax.f32 %v6359_v54, %v6360_v55  ;;  %6368 = vst [vmem:[#allocation31_spill] sm:$0xff] %v5554_v41 }
 0x1f2   : > { %v3302_v59 = vmax.f32 %v6358_v17, %v3222_v50  ;;  %v3333_v8 = vmax.f32 %v3269_v29, 0.0  ;;  %v6365_v44 = vmax.f32 %v6363_v31, %v6364_v22  ;;  %v3721_v46 = vsel %vm3710_vm3, %v3499_v60, %v5488_v0  ;;  %v6366_v50 = vld [vmem:[#allocation29_spill] sm:$0xff] }
 0x1f3   : > { %v3301_v52 = vmax.f32 %v6361_v37, %v3221_v48  ;;  %v3364_v58 = vmax.f32 %v3300_v15, 0.0  ;;  %v3335_v12 = vmax.f32 %v3271_v20, 0.0  ;;  %v3507_v56 = vrot.slane %v3334_v61, %v4929_v39 }
 0x1f4   : > { %v3303_v21 = vmax.f32 %v6365_v44, %v3223_v34  ;;  %v3366_v49 = vmax.f32 %v3302_v59, 0.0  ;;  %v3503_v14 = vrot.slane %v3333_v8, %v4929_v39  ;;  %v463_v47 = vadd.f32 %v5425_v51, %v6366_v50 }
 0x1f5   : > { %v3365_v13 = vmax.f32 %v3301_v52, 0.0  ;;  %v3627_v10 = vrot.slane %v3364_v58, %v4929_v39  ;;  %v3511_v43 = vrot.slane %v3335_v12, %v4929_v39  ;;  %v623_v0 = vadd.f32 %v5425_v51, %v6367_v32 }
 0x1f6   : > { %v3367_v2 = vmax.f32 %v3303_v21, 0.0  ;;  %v3635_v1 = vrot.slane %v3366_v49, %v4929_v39  ;;  %v3722_v5 = vsel %vm3712_vm4, %v3503_v14, %v3721_v46  ;;  %v1049_v7 = vcombine.high %v463_v47, %v463_v47  ;;  %v6369_v21 = vld [vmem:[#allocation32_spill] sm:$0xff] }
 0x1f7   : > { %v3631_v57 = vrot.slane %v3365_v13, %v4929_v39  ;;  %v3749_v29 = vsel %vm3710_vm3, %v3627_v10, %v3748_v26  ;;  %v3723_v48 = vsel %vm3714_vm5, %v3507_v56, %v3722_v5  ;;  %v1056_v53 = vrot.slane %v463_v47, %v4923_v30  ;;  %v6370_v10 = vld [vmem:[#allocation35_spill] sm:$0xff]  ;;  %v6371_v47 = vld [vmem:[#allocation41_spill] sm:$0xff] }
 0x1f8   : > { %v3639_v11 = vrot.slane %v3367_v2, %v4929_v39  ;;  %v3724_v15 = vsel %vm3716_vm6, %v3511_v43, %v3723_v48  ;;  %v1593_v16 = vcombine.high %v623_v0, %v623_v0  ;;  %v1600_v3 = vrot.slane %v623_v0, %v4923_v30  ;;  %v6372_v0 = vld [vmem:[#allocation47_spill] sm:$0xff] }
 0x1f9   : > { %v3750_v25 = vsel %vm3712_vm4, %v3631_v57, %v3749_v29  ;;  %3776 = vst [vmem:[%s5414_s10 + $0x8] sm:$0xff] %v3724_v15  ;;  %v1063_v20 = vrot.slane %v1049_v7, %v4923_v30  ;;  %v1064_v61 = vcombine.high %v1056_v53, %v1056_v53  ;;  %v3977_v34 = vrot.slane %v1056_v53, 9 }
 0x1fa   : > { %v3751_v26 = vsel %vm3714_vm5, %v3635_v1, %v3750_v25  ;;  %v1607_v17 = vrot.slane %v1593_v16, %v4923_v30  ;;  %v1608_v59 = vcombine.high %v1600_v3, %v1600_v3  ;;  %v4105_v8 = vrot.slane %v1600_v3, 9 }
 0x1fb   : > { %v3752_v18 = vsel %vm3716_vm6, %v3639_v11, %v3751_v26  ;;  %v1065_v60 = vcombine.high %v1063_v20, %v1063_v20  ;;  %v3978_v54 = vrot.slane %v1064_v61, 9  ;;  %v3979_v55 = vrot.slane %v1063_v20, 9  ;;  %v5585_v11 = vpop.f32.mrb[31].mxu0 }
 0x1fc   : > { %3780 = vst [vmem:[%s5414_s10 + $0x28] sm:$0xff] %v3752_v18  ;;  %v5559_v37 = vmax.f32 %v1056_v53, %v3977_v34  ;;  %v1609_v52 = vcombine.high %v1607_v17, %v1607_v17  ;;  %v4106_v58 = vrot.slane %v1608_v59, 9  ;;  %v4107_v12 = vrot.slane %v1607_v17, 9  ;;  %6373 = vst [vmem:[#allocation15_spill] sm:$0xff] %v5585_v11 }
 0x1fd   : > { %v5561_v56 = vmax.f32 %v1600_v3, %v4105_v8  ;;  %v3980_v31 = vrot.slane %v1065_v60, 9  ;;  %v5563_v22 = vmax.f32 %v1064_v61, %v3978_v54  ;;  %v5565_v44 = vmax.f32 %v1063_v20, %v3979_v55  ;;  %v5590_v61 = vpop.f32.mrb[31].mxu1 }
 0x1fe   : > { %v458_v49 = vadd.f32 %v5425_v51, %v6369_v21  ;;  %v4108_v14 = vrot.slane %v1609_v52, 9  ;;  %v5569_v46 = vmax.f32 %v1608_v59, %v4106_v58  ;;  %v5571_v13 = vmax.f32 %v1607_v17, %v4107_v12  ;;  %6374 = vst [vmem:[#allocation28_spill] sm:$0xff] %v5590_v61 }
 0x1ff   : > { %v618_v43 = vadd.f32 %v5425_v51, %v6370_v10  ;;  %v5575_v2 = vmax.f32 %v1065_v60, %v3980_v31  ;;  %v473_v5 = vadd.f32 %v5425_v51, %v6371_v47  ;;  %v633_v48 = vadd.f32 %v5425_v51, %v6372_v0 }
 0x200   : > { %v1032_v1 = vcombine.high %v458_v49, %v458_v49  ;;  %v1039_v50 = vrot.slane %v458_v49, %v4923_v30  ;;  %v5580_v57 = vmax.f32 %v1609_v52, %v4108_v14 }
 0x201   : > { %v1576_v29 = vcombine.high %v618_v43, %v618_v43  ;;  %v1583_v32 = vrot.slane %v618_v43, %v4923_v30  ;;  %v1083_v25 = vcombine.high %v473_v5, %v473_v5  ;;  %v1090_v20 = vrot.slane %v473_v5, %v4923_v30 }
 0x202   : > { %v1046_v7 = vrot.slane %v1032_v1, %v4923_v30  ;;  %v1047_v53 = vcombine.high %v1039_v50, %v1039_v50  ;;  %v3973_v15 = vrot.slane %v1039_v50, 9 }
 0x203   : > { %v1590_v16 = vrot.slane %v1576_v29, %v4923_v30  ;;  %v1591_v3 = vcombine.high %v1583_v32, %v1583_v32  ;;  %v4101_v26 = vrot.slane %v1583_v32, 9  ;;  %v1097_v47 = vrot.slane %v1083_v25, %v4923_v30 }
 0x204   : > { %v1048_v34 = vcombine.high %v1046_v7, %v1046_v7  ;;  %v3974_v18 = vrot.slane %v1047_v53, 9  ;;  %v3975_v17 = vrot.slane %v1046_v7, 9  ;;  %v5592_v59 = vmax.f32 %v1039_v50, %v3973_v15 }
 0x205   : > { %v1592_v8 = vcombine.high %v1590_v16, %v1590_v16  ;;  %v4102_v60 = vrot.slane %v1591_v3, 9  ;;  %v4103_v54 = vrot.slane %v1590_v16, 9  ;;  %v5594_v55 = vmax.f32 %v1583_v32, %v4101_v26 }
 0x206   : > { %v3976_v52 = vrot.slane %v1048_v34, 9  ;;  %v5596_v58 = vmax.f32 %v1047_v53, %v3974_v18  ;;  %v5598_v12 = vmax.f32 %v1046_v7, %v3975_v17  ;;  %v1098_v0 = vcombine.high %v1090_v20, %v1090_v20 }
 0x207   : > { %v4104_v21 = vrot.slane %v1592_v8, 9  ;;  %v5602_v49 = vmax.f32 %v1591_v3, %v4102_v60  ;;  %v5604_v14 = vmax.f32 %v1590_v16, %v4103_v54  ;;  %v1099_v53 = vcombine.high %v1097_v47, %v1097_v47  ;;  %v6376_v60 = vld [vmem:[#allocation50_spill] sm:$0xff] }
 0x208   : > { %v5608_v43 = vmax.f32 %v1048_v34, %v3976_v52  ;;  %v3985_v15 = vrot.slane %v1090_v20, 9  ;;  %v3987_v16 = vrot.slane %v1097_v47, 9  ;;  %v3986_v26 = vrot.slane %v1098_v0, 9 }
 0x209   : > { %v5615_v5 = vmax.f32 %v1592_v8, %v4104_v21  ;;  %v1627_v25 = vcombine.high %v633_v48, %v633_v48  ;;  %v1634_v34 = vrot.slane %v633_v48, %v4923_v30  ;;  %v3988_v18 = vrot.slane %v1099_v53, 9  ;;  %v6378_v48 = vld [vmem:[#allocation54_spill] sm:$0xff] }
 0x20a   : > { %v5626_v17 = vmax.f32 %v1090_v20, %v3985_v15  ;;  %v5628_v8 = vmax.f32 %v1097_v47, %v3987_v16  ;;  %v468_v54 = vadd.f32 %v5425_v51, %v6376_v60  ;;  %v5632_v52 = vmax.f32 %v1098_v0, %v3986_v26 }
 0x20b   : > { %v1641_v21 = vrot.slane %v1627_v25, %v4923_v30  ;;  %v1642_v32 = vcombine.high %v1634_v34, %v1634_v34  ;;  %v4113_v29 = vrot.slane %v1634_v34, 9  ;;  %v5635_v10 = vmax.f32 %v1099_v53, %v3988_v18 }
 0x20c   : > { %6375 = vst [vmem:[#allocation19_spill] sm:$0xff] %v5628_v8  ;;  %v1066_v3 = vcombine.high %v468_v54, %v468_v54  ;;  %v1073_v7 = vrot.slane %v468_v54, %v4923_v30  ;;  %v628_v20 = vadd.f32 %v5425_v51, %v6378_v48  ;;  %v6401_v8 = vld [vmem:[#allocation71_spill] sm:$0xff] }
 0x20d   : > { %6377 = vst [vmem:[#allocation27_spill] sm:$0xff] %v5635_v10  ;;  %v1643_v15 = vcombine.high %v1641_v21, %v1641_v21  ;;  %v4114_v47 = vrot.slane %v1642_v32, 9  ;;  %v4115_v16 = vrot.slane %v1641_v21, 9  ;;  %v5640_v50 = vmax.f32 %v1634_v34, %v4113_v29 }
 0x20e   : > { %v1080_v0 = vrot.slane %v1066_v3, %v4923_v30  ;;  %v1081_v26 = vcombine.high %v1073_v7, %v1073_v7  ;;  %v3981_v60 = vrot.slane %v1073_v7, 9  ;;  %v1610_v25 = vcombine.high %v628_v20, %v628_v20 }
 0x20f   : > { %6379 = vst [vmem:[#allocation18_spill] sm:$0xff] %v5640_v50  ;;  %v4116_v1 = vrot.slane %v1643_v15, 9  ;;  %v5643_v31 = vmax.f32 %v1642_v32, %v4114_v47  ;;  %v5645_v53 = vmax.f32 %v1641_v21, %v4115_v16  ;;  %v1617_v18 = vrot.slane %v628_v20, %v4923_v30 }
 0x210   : > { %v1082_v54 = vcombine.high %v1080_v0, %v1080_v0  ;;  %v3982_v61 = vrot.slane %v1081_v26, 9  ;;  %v3983_v48 = vrot.slane %v1080_v0, 9  ;;  %v5648_v11 = vmax.f32 %v1073_v7, %v3981_v60 }
 0x211   : > { %6380 = vst [vmem:[#allocation33_spill] sm:$0xff] %v5643_v31  ;;  %6381 = vst [vmem:[#allocation20_spill] sm:$0xff] %v5645_v53  ;;  %v5650_v41 = vmax.f32 %v1643_v15, %v4116_v1  ;;  %v1624_v29 = vrot.slane %v1610_v25, %v4923_v30  ;;  %v1625_v3 = vcombine.high %v1617_v18, %v1617_v18  ;;  %v4109_v34 = vrot.slane %v1617_v18, 9 }
 0x212   : > { %v3984_v23 = vrot.slane %v1082_v54, 9  ;;  %v5653_v36 = vmax.f32 %v1081_v26, %v3982_v61  ;;  %v5655_v32 = vmax.f32 %v1080_v0, %v3983_v48  ;;  %v6386_v61 = vld [vmem:[#allocation58_spill] sm:$0xff] }
 0x213   : > { %6382 = vst [vmem:[#allocation13_spill] sm:$0xff] %v5650_v41  ;;  %v1626_v20 = vcombine.high %v1624_v29, %v1624_v29  ;;  %v4110_v47 = vrot.slane %v1625_v3, 9  ;;  %v4111_v16 = vrot.slane %v1624_v29, 9  ;;  %v5659_v33 = vmax.f32 %v1617_v18, %v4109_v34  ;;  %v6389_v34 = vld [vmem:[#allocation62_spill] sm:$0xff] }
 0x214   : > { %6383 = vst [vmem:[#allocation16_spill] sm:$0xff] %v5655_v32  ;;  %v5661_v7 = vmax.f32 %v1082_v54, %v3984_v23  ;;  %v483_v0 = vadd.f32 %v5425_v51, %v6386_v61  ;;  %v643_v15 = vadd.f32 %v5425_v51, %v6389_v34 }
 0x215   : > { %6384 = vst [vmem:[#allocation17_spill] sm:$0xff] %v5659_v33  ;;  %v4112_v26 = vrot.slane %v1626_v20, 9  ;;  %v5669_v60 = vmax.f32 %v1625_v3, %v4110_v47  ;;  %v5671_v25 = vmax.f32 %v1624_v29, %v4111_v16  ;;  %v6391_v47 = vld [vmem:[#allocation69_spill] sm:$0xff] }
 0x216   : > { %6385 = vst [vmem:[#allocation44_spill] sm:$0xff] %v5661_v7  ;;  %v1117_v54 = vcombine.high %v483_v0, %v483_v0  ;;  %v1124_v48 = vrot.slane %v483_v0, %v4923_v30  ;;  %v478_v16 = vadd.f32 %v5425_v51, %v6391_v47  ;;  %v1661_v21 = vcombine.high %v643_v15, %v643_v15 }
 0x217   : > { %6387 = vst [vmem:[#allocation34_spill] sm:$0xff] %v5669_v60  ;;  %6388 = vst [vmem:[#allocation46_spill] sm:$0xff] %v5671_v25  ;;  %v5680_v1 = vmax.f32 %v1626_v20, %v4112_v26  ;;  %v1668_v20 = vrot.slane %v643_v15, %v4923_v30 }
 0x218   : > { %v1131_v61 = vrot.slane %v1117_v54, %v4923_v30  ;;  %v1132_v23 = vcombine.high %v1124_v48, %v1124_v48  ;;  %v3993_v18 = vrot.slane %v1124_v48, 9  ;;  %v1100_v26 = vcombine.high %v478_v16, %v478_v16 }
 0x219   : > { %6390 = vst [vmem:[#allocation37_spill] sm:$0xff] %v5680_v1  ;;  %v1107_v34 = vrot.slane %v478_v16, %v4923_v30  ;;  %v1675_v47 = vrot.slane %v1661_v21, %v4923_v30  ;;  %v1676_v53 = vcombine.high %v1668_v20, %v1668_v20  ;;  %v4121_v54 = vrot.slane %v1668_v20, 9 }
 0x21a   : > { %v1133_v3 = vcombine.high %v1131_v61, %v1131_v61  ;;  %v3994_v9 = vrot.slane %v1132_v23, 9  ;;  %v3995_v6 = vrot.slane %v1131_v61, 9  ;;  %v5693_v29 = vmax.f32 %v1124_v48, %v3993_v18 }
 0x21b   : > { %v1114_v25 = vrot.slane %v1100_v26, %v4923_v30  ;;  %v1115_v15 = vcombine.high %v1107_v34, %v1107_v34  ;;  %v1677_v41 = vcombine.high %v1675_v47, %v1675_v47  ;;  %v4122_v1 = vrot.slane %v1676_v53, 9 }
 0x21c   : > { %6392 = vst [vmem:[#allocation45_spill] sm:$0xff] %v5693_v29  ;;  %v3996_v10 = vrot.slane %v1133_v3, 9  ;;  %v5697_v7 = vmax.f32 %v1132_v23, %v3994_v9  ;;  %v5699_v0 = vmax.f32 %v1131_v61, %v3995_v6  ;;  %v4123_v16 = vrot.slane %v1675_v47, 9 }
 0x21d   : > { %v5701_v31 = vmax.f32 %v1668_v20, %v4121_v54  ;;  %v1116_v18 = vcombine.high %v1114_v25, %v1114_v25  ;;  %v3989_v48 = vrot.slane %v1107_v34, 9  ;;  %v3990_v21 = vrot.slane %v1115_v15, 9 }
 0x21e   : > { %6393 = vst [vmem:[#allocation36_spill] sm:$0xff] %v5697_v7  ;;  %6394 = vst [vmem:[#allocation49_spill] sm:$0xff] %v5699_v0  ;;  %v5703_v60 = vmax.f32 %v1133_v3, %v3996_v10  ;;  %v4124_v50 = vrot.slane %v1677_v41, 9  ;;  %v5705_v33 = vmax.f32 %v1676_v53, %v4122_v1  ;;  %v5707_v26 = vmax.f32 %v1675_v47, %v4123_v16 }
 0x21f   : > { %6395 = vst [vmem:[#allocation39_spill] sm:$0xff] %v5701_v31  ;;  %v3991_v9 = vrot.slane %v1114_v25, 9  ;;  %v3992_v23 = vrot.slane %v1116_v18, 9  ;;  %v5709_v6 = vmax.f32 %v1107_v34, %v3989_v48  ;;  %v5711_v61 = vmax.f32 %v1115_v15, %v3990_v21 }
 0x220   : > { %6396 = vst [vmem:[#allocation51_spill] sm:$0xff] %v5703_v60  ;;  %6397 = vst [vmem:[#allocation42_spill] sm:$0xff] %v5705_v33  ;;  %v638_v20 = vadd.f32 %v5425_v51, %v6401_v8  ;;  %v5715_v54 = vmax.f32 %v1677_v41, %v4124_v50  ;;  %v493_v3 = vadd.f32 %v5425_v51, %v5273_v4 }
 0x221   : > { %6398 = vst [vmem:[#allocation48_spill] sm:$0xff] %v5707_v26  ;;  %6399 = vst [vmem:[#allocation38_spill] sm:$0xff] %v5709_v6  ;;  %v5717_v10 = vmax.f32 %v1114_v25, %v3991_v9  ;;  %v653_v53 = vadd.f32 %v5425_v51, %v5275_v40  ;;  %v5723_v1 = vmax.f32 %v1116_v18, %v3992_v23 }
 0x222   : > { %6400 = vst [vmem:[#allocation52_spill] sm:$0xff] %v5711_v61  ;;  %6402 = vst [vmem:[#allocation40_spill] sm:$0xff] %v5715_v54  ;;  %v1644_v15 = vcombine.high %v638_v20, %v638_v20  ;;  %v1651_v50 = vrot.slane %v638_v20, %v4923_v30  ;;  %v1151_v8 = vcombine.high %v493_v3, %v493_v3 }
 0x223   : > { %6403 = vst [vmem:[#allocation55_spill] sm:$0xff] %v5717_v10  ;;  %6404 = vst [vmem:[#allocation43_spill] sm:$0xff] %v5723_v1  ;;  %v1158_v4 = vrot.slane %v493_v3, %v4923_v30  ;;  %v1695_v16 = vcombine.high %v653_v53, %v653_v53  ;;  %v1702_v18 = vrot.slane %v653_v53, %v4923_v30 }
 0x224   : > { %v1658_v25 = vrot.slane %v1644_v15, %v4923_v30  ;;  %v1659_v48 = vcombine.high %v1651_v50, %v1651_v50  ;;  %v4117_v21 = vrot.slane %v1651_v50, 9  ;;  %v1165_v9 = vrot.slane %v1151_v8, %v4923_v30 }
 0x225   : > { %v1166_v23 = vcombine.high %v1158_v4, %v1158_v4  ;;  %v4001_v34 = vrot.slane %v1158_v4, 9  ;;  %v1709_v20 = vrot.slane %v1695_v16, %v4923_v30 }
 0x226   : > { %v1660_v47 = vcombine.high %v1658_v25, %v1658_v25  ;;  %v4119_v41 = vrot.slane %v1658_v25, 9  ;;  %v4118_v7 = vrot.slane %v1659_v48, 9  ;;  %v5739_v3 = vmax.f32 %v1651_v50, %v4117_v21 }
 0x227   : > { %v1167_v61 = vcombine.high %v1165_v9, %v1165_v9  ;;  %v4002_v40 = vrot.slane %v1166_v23, 9  ;;  %v4003_v1 = vrot.slane %v1165_v9, 9  ;;  %v5743_v53 = vmax.f32 %v1158_v4, %v4001_v34 }
 0x228   : > { %6405 = vst [vmem:[#allocation21_spill] sm:$0xff] %v5739_v3  ;;  %v4120_v60 = vrot.slane %v1660_v47, 9  ;;  %v5741_v15 = vmax.f32 %v1658_v25, %v4119_v41  ;;  %v5745_v0 = vmax.f32 %v1659_v48, %v4118_v7  ;;  %v1710_v41 = vcombine.high %v1702_v18, %v1702_v18 }
 0x229   : > { %6407 = vst [vmem:[#allocation25_spill] sm:$0xff] %v5743_v53  ;;  %v4004_v10 = vrot.slane %v1167_v61, 9  ;;  %v5749_v29 = vmax.f32 %v1166_v23, %v4002_v40  ;;  %v5755_v21 = vmax.f32 %v1165_v9, %v4003_v1  ;;  %v1711_v7 = vcombine.high %v1709_v20, %v1709_v20 }
 0x22a   : > { %6406 = vst [vmem:[#allocation22_spill] sm:$0xff] %v5741_v15  ;;  %6408 = vst [vmem:[#allocation26_spill] sm:$0xff] %v5745_v0  ;;  %v5751_v16 = vmax.f32 %v1660_v47, %v4120_v60  ;;  %v4129_v25 = vrot.slane %v1702_v18, 9  ;;  %v4130_v40 = vrot.slane %v1710_v41, 9  ;;  %v4131_v23 = vrot.slane %v1709_v20, 9 }
 0x22b   : > { %6409 = vst [vmem:[#allocation56_spill] sm:$0xff] %v5749_v29  ;;  %6411 = vst [vmem:[#allocation53_spill] sm:$0xff] %v5755_v21  ;;  %v5759_v4 = vmax.f32 %v1167_v61, %v4004_v10  ;;  %v488_v60 = vadd.f32 %v5425_v51, %v5286_v63  ;;  %v4132_v47 = vrot.slane %v1711_v7, 9  ;;  %v648_v1 = vadd.f32 %v5425_v51, %v5305_v42 }
 0x22c   : > { %6410 = vst [vmem:[#allocation63_spill] sm:$0xff] %v5751_v16  ;;  %v5765_v50 = vmax.f32 %v1702_v18, %v4129_v25  ;;  %v503_v61 = vadd.f32 %v5425_v51, %v5320_v62  ;;  %v5771_v10 = vmax.f32 %v1710_v41, %v4130_v40  ;;  %v5773_v9 = vmax.f32 %v1709_v20, %v4131_v23 }
 0x22d   : > { %6412 = vst [vmem:[#allocation66_spill] sm:$0xff] %v5759_v4  ;;  %v1134_v34 = vcombine.high %v488_v60, %v488_v60  ;;  %v1141_v48 = vrot.slane %v488_v60, %v4923_v30  ;;  %v5776_v8 = vmax.f32 %v1711_v7, %v4132_v47  ;;  %v1678_v54 = vcombine.high %v648_v1, %v648_v1 }
 0x22e   : > { %6413 = vst [vmem:[#allocation59_spill] sm:$0xff] %v5765_v50  ;;  %6414 = vst [vmem:[#allocation65_spill] sm:$0xff] %v5771_v10  ;;  %v1685_v63 = vrot.slane %v648_v1, %v4923_v30  ;;  %v1185_v18 = vcombine.high %v503_v61, %v503_v61  ;;  %v1192_v26 = vrot.slane %v503_v61, %v4923_v30 }
 0x22f   : > { %6415 = vst [vmem:[#allocation57_spill] sm:$0xff] %v5773_v9  ;;  %6416 = vst [vmem:[#allocation68_spill] sm:$0xff] %v5776_v8  ;;  %v1148_v25 = vrot.slane %v1134_v34, %v4923_v30  ;;  %v1149_v16 = vcombine.high %v1141_v48, %v1141_v48  ;;  %v3997_v42 = vrot.slane %v1141_v48, 9  ;;  %v1692_v62 = vrot.slane %v1678_v54, %v4923_v30 }
 0x230   : > { %v1693_v41 = vcombine.high %v1685_v63, %v1685_v63  ;;  %v4125_v20 = vrot.slane %v1685_v63, 9  ;;  %v1199_v40 = vrot.slane %v1185_v18, %v4923_v30 }
 0x231   : > { %v1150_v23 = vcombine.high %v1148_v25, %v1148_v25  ;;  %v3998_v60 = vrot.slane %v1149_v16, 9  ;;  %v3999_v7 = vrot.slane %v1148_v25, 9  ;;  %v5783_v47 = vmax.f32 %v1141_v48, %v3997_v42 }
 0x232   : > { %v1694_v15 = vcombine.high %v1692_v62, %v1692_v62  ;;  %v4126_v1 = vrot.slane %v1693_v41, 9  ;;  %v4127_v33 = vrot.slane %v1692_v62, 9  ;;  %v5785_v0 = vmax.f32 %v1685_v63, %v4125_v20 }
 0x233   : > { %6417 = vst [vmem:[#allocation61_spill] sm:$0xff] %v5783_v47  ;;  %v4000_v34 = vrot.slane %v1150_v23, 9  ;;  %v5787_v31 = vmax.f32 %v1149_v16, %v3998_v60  ;;  %v5789_v61 = vmax.f32 %v1148_v25, %v3999_v7  ;;  %v1200_v25 = vcombine.high %v1192_v26, %v1192_v26 }
 0x234   : > { %6418 = vst [vmem:[#allocation67_spill] sm:$0xff] %v5785_v0  ;;  %v4128_v3 = vrot.slane %v1694_v15, 9  ;;  %v5793_v18 = vmax.f32 %v1693_v41, %v4126_v1  ;;  %v5795_v6 = vmax.f32 %v1692_v62, %v4127_v33  ;;  %v1201_v62 = vcombine.high %v1199_v40, %v1199_v40 }
 0x235   : > { %6419 = vst [vmem:[#allocation60_spill] sm:$0xff] %v5787_v31  ;;  %6420 = vst [vmem:[#allocation70_spill] sm:$0xff] %v5789_v61  ;;  %v5799_v42 = vmax.f32 %v1150_v23, %v4000_v34  ;;  %v4009_v60 = vrot.slane %v1192_v26, 9  ;;  %v4010_v7 = vrot.slane %v1200_v25, 9  ;;  %v4011_v1 = vrot.slane %v1199_v40, 9 }
 0x236   : > { %6421 = vst [vmem:[#allocation64_spill] sm:$0xff] %v5793_v18  ;;  %6422 = vst [vmem:[#allocation29_spill] sm:$0xff] %v5795_v6  ;;  %v5805_v20 = vmax.f32 %v1694_v15, %v4128_v3  ;;  %v4012_v48 = vrot.slane %v1201_v62, 9  ;;  %v663_v3 = vadd.f32 %v5425_v51, %v5335_v35  ;;  %v498_v15 = vadd.f32 %v5425_v51, %v5357_v45 }
 0x237   : > { %6423 = vst [vmem:[#allocation30_spill] sm:$0xff] %v5799_v42  ;;  %v2972_v41 = vmax.f32 %v1192_v26, %v4009_v60  ;;  %v2973_v16 = vmax.f32 %v1200_v25, %v4010_v7  ;;  %v2974_v33 = vmax.f32 %v1199_v40, %v4011_v1  ;;  %v658_v63 = vadd.f32 %v5425_v51, %v5359_v24 }
 0x238   : > { %6424 = vst [vmem:[#allocation32_spill] sm:$0xff] %v5805_v20  ;;  %v2975_v23 = vmax.f32 %v1201_v62, %v4012_v48  ;;  %v1729_v54 = vcombine.high %v663_v3, %v663_v3  ;;  %v1736_v9 = vrot.slane %v663_v3, %v4923_v30  ;;  %v1168_v6 = vcombine.high %v498_v15, %v498_v15 }
 0x239   : > { %v1175_v34 = vrot.slane %v498_v15, %v4923_v30  ;;  %v1712_v8 = vcombine.high %v658_v63, %v658_v63  ;;  %v1719_v20 = vrot.slane %v658_v63, %v4923_v30  ;;  %v5826_v35 = vadd.f32 %v5425_v51, %v5383_v38 }
 0x23a   : > { %v1743_v45 = vrot.slane %v1729_v54, %v4923_v30  ;;  %v1744_v26 = vcombine.high %v1736_v9, %v1736_v9  ;;  %v4137_v40 = vrot.slane %v1736_v9, 9  ;;  %v1182_v24 = vrot.slane %v1168_v6, %v4923_v30 }
 0x23b   : > { %v1183_v48 = vcombine.high %v1175_v34, %v1175_v34  ;;  %v4005_v25 = vrot.slane %v1175_v34, 9  ;;  %v1726_v62 = vrot.slane %v1712_v8, %v4923_v30  ;;  %v1727_v60 = vcombine.high %v1719_v20, %v1719_v20 }
 0x23c   : > { %v1745_v7 = vcombine.high %v1743_v45, %v1743_v45  ;;  %v4138_v1 = vrot.slane %v1744_v26, 9  ;;  %v4139_v3 = vrot.slane %v1743_v45, 9  ;;  %v3100_v15 = vmax.f32 %v1736_v9, %v4137_v40 }
 0x23d   : > { %v1184_v63 = vcombine.high %v1182_v24, %v1182_v24  ;;  %v4006_v4 = vrot.slane %v1183_v48, 9  ;;  %v4007_v42 = vrot.slane %v1182_v24, 9  ;;  %v2968_v38 = vmax.f32 %v1175_v34, %v4005_v25 }
 0x23e   : > { %v4140_v51 = vrot.slane %v1745_v7, 9  ;;  %v3101_v10 = vmax.f32 %v1744_v26, %v4138_v1  ;;  %v3102_v54 = vmax.f32 %v1743_v45, %v4139_v3  ;;  %v1728_v18 = vcombine.high %v1726_v62, %v1726_v62 }
 0x23f   : > { %v4008_v50 = vrot.slane %v1184_v63, 9  ;;  %v2969_v0 = vmax.f32 %v1183_v48, %v4006_v4  ;;  %v2970_v6 = vmax.f32 %v1182_v24, %v4007_v42  ;;  %v3176_v21 = vmax.f32 %v2968_v38, %v2972_v41 }
 0x240   : > { %v3103_v61 = vmax.f32 %v1745_v7, %v4140_v51  ;;  %v4133_v29 = vrot.slane %v1719_v20, 9  ;;  %v4134_v8 = vrot.slane %v1727_v60, 9  ;;  %v4135_v31 = vrot.slane %v1726_v62, 9 }
 0x241   : > { %v2971_v53 = vmax.f32 %v1184_v63, %v4008_v50  ;;  %v3177_v47 = vmax.f32 %v2969_v0, %v2973_v16  ;;  %v3178_v32 = vmax.f32 %v2970_v6, %v2974_v33  ;;  %v6425_v9 = vmax.f32 %v5592_v59, %v5559_v37 }
 0x242   : > { %v4136_v34 = vrot.slane %v1728_v18, 9  ;;  %v3096_v25 = vmax.f32 %v1719_v20, %v4133_v29  ;;  %v3097_v26 = vmax.f32 %v1727_v60, %v4134_v8  ;;  %v3098_v45 = vmax.f32 %v1726_v62, %v4135_v31 }
 0x243   : > { %v3272_v40 = vmax.f32 %v6425_v9, %v3176_v21  ;;  %v3179_v1 = vmax.f32 %v2971_v53, %v2975_v23  ;;  %v6426_v4 = vmax.f32 %v5596_v58, %v5563_v22  ;;  %v6427_v41 = vmax.f32 %v5598_v12, %v5565_v44 }
 0x244   : > { %v3099_v0 = vmax.f32 %v1728_v18, %v4136_v34  ;;  %v3240_v16 = vmax.f32 %v3096_v25, %v3100_v15  ;;  %v3241_v33 = vmax.f32 %v3097_v26, %v3101_v10  ;;  %v3242_v48 = vmax.f32 %v3098_v45, %v3102_v54 }
 0x245   : > { %v3273_v42 = vmax.f32 %v6426_v4, %v3177_v47  ;;  %v3274_v24 = vmax.f32 %v6427_v41, %v3178_v32  ;;  %v3336_v50 = vmax.f32 %v3272_v40, 0.0  ;;  %v6428_v37 = vmax.f32 %v5608_v43, %v5575_v2 }
 0x246   : > { %v3243_v21 = vmax.f32 %v3099_v0, %v3103_v61  ;;  %v6429_v22 = vmax.f32 %v5594_v55, %v5561_v56  ;;  %v6430_v44 = vmax.f32 %v5602_v49, %v5569_v46  ;;  %v6431_v32 = vmax.f32 %v5604_v14, %v5571_v13 }
 0x247   : > { %v3275_v59 = vmax.f32 %v6428_v37, %v3179_v1  ;;  %v3337_v29 = vmax.f32 %v3273_v42, 0.0  ;;  %v3338_v31 = vmax.f32 %v3274_v24, 0.0  ;;  %v3515_v53 = vrot.slane %v3336_v50, %v4929_v39 }
 0x248   : > { %v3304_v58 = vmax.f32 %v6429_v22, %v3240_v16  ;;  %v3305_v12 = vmax.f32 %v6430_v44, %v3241_v33  ;;  %v3306_v10 = vmax.f32 %v6431_v32, %v3242_v48  ;;  %v1219_v61 = vcombine.high %v5826_v35, %v5826_v35 }
 0x249   : > { %v3339_v47 = vmax.f32 %v3275_v59, 0.0  ;;  %v3519_v2 = vrot.slane %v3337_v29, %v4929_v39  ;;  %v3523_v43 = vrot.slane %v3338_v31, %v4929_v39  ;;  %v6432_v56 = vmax.f32 %v5615_v5, %v5580_v57 }
 0x24a   : > { %v3368_v18 = vmax.f32 %v3304_v58, 0.0  ;;  %v3369_v20 = vmax.f32 %v3305_v12, 0.0  ;;  %v3370_v46 = vmax.f32 %v3306_v10, 0.0  ;;  %v1226_v14 = vrot.slane %v5826_v35, %v4923_v30  ;;  %v5874_v35 = vld [vmem:[%s6115_s2] ss:$0 sm:$0xff] }
 0x24b   : > { %v3307_v55 = vmax.f32 %v6432_v56, %v3243_v21  ;;  %v3527_v49 = vrot.slane %v3339_v47, %v4929_v39  ;;  %v3725_v13 = vsel %vm3704_vm0, %v3519_v2, %v3515_v53  ;;  %v1233_v23 = vrot.slane %v1219_v61, %v4923_v30 }
 0x24c   : > { %v3726_v62 = vsel %vm3706_vm1, %v3523_v43, %v3725_v13  ;;  %v3643_v7 = vrot.slane %v3368_v18, %v4929_v39  ;;  %v3647_v57 = vrot.slane %v3369_v20, %v4929_v39  ;;  %v3651_v5 = vrot.slane %v3370_v46, %v4929_v39 }
 0x24d   : > { %v3371_v60 = vmax.f32 %v3307_v55, 0.0  ;;  %v1234_v3 = vcombine.high %v1226_v14, %v1226_v14  ;;  %v1235_v15 = vcombine.high %v1233_v23, %v1233_v23  ;;  %v4017_v63 = vrot.slane %v1226_v14, 9 }
 0x24e   : > { %v3753_v51 = vsel %vm3704_vm0, %v3647_v57, %v3643_v7  ;;  %v4019_v54 = vrot.slane %v1233_v23, 9  ;;  %v673_v6 = vadd.f32 %v5874_v35, %v5418_v19  ;;  %v508_v1 = vadd.f32 %v5874_v35, %v5435_v27 }
 0x24f   : > { %v3655_v38 = vrot.slane %v3371_v60, %v4929_v39  ;;  %v3754_v8 = vsel %vm3706_vm1, %v3651_v5, %v3753_v51  ;;  %v4018_v9 = vrot.slane %v1234_v3, 9  ;;  %v4020_v40 = vrot.slane %v1235_v15, 9 }
 0x250   : > { %v2980_v34 = vmax.f32 %v1226_v14, %v4017_v63  ;;  %v2982_v25 = vmax.f32 %v1233_v23, %v4019_v54  ;;  %v1763_v26 = vcombine.high %v673_v6, %v673_v6  ;;  %v1770_v45 = vrot.slane %v673_v6, %v4923_v30 }
 0x251   : > { %v2981_v4 = vmax.f32 %v1234_v3, %v4018_v9  ;;  %v2983_v42 = vmax.f32 %v1235_v15, %v4020_v40  ;;  %v5883_v41 = vsel %vm3708_vm2, %v3527_v49, %v3726_v62  ;;  %v668_v19 = vadd.f32 %v5874_v35, %v5438_v28 }
 0x252   : > { %v1777_v24 = vrot.slane %v1763_v26, %v4923_v30  ;;  %v1778_v50 = vcombine.high %v1770_v45, %v1770_v45  ;;  %v4145_v0 = vrot.slane %v1770_v45, 9  ;;  %v1202_v16 = vcombine.high %v508_v1, %v508_v1  ;;  %v6436_v26 = vld [vmem:[#allocation19_spill] sm:$0xff] }
 0x253   : > { %v1209_v33 = vrot.slane %v508_v1, %v4923_v30  ;;  %v1746_v48 = vcombine.high %v668_v19, %v668_v19  ;;  %v1753_v37 = vrot.slane %v668_v19, %v4923_v30  ;;  %v5891_v27 = vsel %vm3708_vm2, %v3655_v38, %v3754_v8 }
 0x254   : > { %v1779_v59 = vcombine.high %v1777_v24, %v1777_v24  ;;  %v4146_v29 = vrot.slane %v1778_v50, 9  ;;  %v4147_v31 = vrot.slane %v1777_v24, 9  ;;  %v3108_v53 = vmax.f32 %v1770_v45, %v4145_v0  ;;  %v6441_v0 = vld [vmem:[#allocation34_spill] sm:$0xff] }
 0x255   : > { %v1216_v21 = vrot.slane %v1202_v16, %v4923_v30  ;;  %v1217_v28 = vcombine.high %v1209_v33, %v1209_v33  ;;  %v4013_v22 = vrot.slane %v1209_v33, 9  ;;  %v1760_v58 = vrot.slane %v1746_v48, %v4923_v30  ;;  %v6442_v16 = vld [vmem:[#allocation33_spill] sm:$0xff] }
 0x256   : > { %v4148_v44 = vrot.slane %v1779_v59, 9  ;;  %v3109_v12 = vmax.f32 %v1778_v50, %v4146_v29  ;;  %v3110_v32 = vmax.f32 %v1777_v24, %v4147_v31  ;;  %v1761_v10 = vcombine.high %v1753_v37, %v1753_v37  ;;  %v6438_v24 = vld [vmem:[#allocation17_spill] sm:$0xff]  ;;  %v6439_v50 = vld [vmem:[#allocation18_spill] sm:$0xff] }
 0x257   : > { %v1218_v47 = vcombine.high %v1216_v21, %v1216_v21  ;;  %v4014_v2 = vrot.slane %v1217_v28, 9  ;;  %v4015_v43 = vrot.slane %v1216_v21, 9  ;;  %v2976_v61 = vmax.f32 %v1209_v33, %v4013_v22 }
 0x258   : > { %v3111_v56 = vmax.f32 %v1779_v59, %v4148_v44  ;;  %v1762_v55 = vcombine.high %v1760_v58, %v1760_v58  ;;  %v4141_v18 = vrot.slane %v1753_v37, 9  ;;  %v4142_v20 = vrot.slane %v1761_v10, 9  ;;  %v6451_v44 = vld [vmem:[#allocation13_spill] sm:$0xff] }
 0x259   : > { %v4016_v46 = vrot.slane %v1218_v47, 9  ;;  %v2977_v49 = vmax.f32 %v1217_v28, %v4014_v2  ;;  %v2978_v13 = vmax.f32 %v1216_v21, %v4015_v43  ;;  %v3180_v14 = vmax.f32 %v2976_v61, %v2980_v34  ;;  %v6435_v34 = vld [vmem:[#allocation16_spill] sm:$0xff] }
 0x25a   : > { %v4143_v23 = vrot.slane %v1760_v58, 9  ;;  %v4144_v62 = vrot.slane %v1762_v55, 9  ;;  %v3104_v60 = vmax.f32 %v1753_v37, %v4141_v18  ;;  %v3105_v7 = vmax.f32 %v1761_v10, %v4142_v20  ;;  %v6445_v37 = vld [vmem:[#allocation27_spill] sm:$0xff]  ;;  %v6448_v21 = vld [vmem:[#allocation20_spill] sm:$0xff] }
 0x25b   : > { %v2979_v57 = vmax.f32 %v1218_v47, %v4016_v46  ;;  %v3181_v5 = vmax.f32 %v2977_v49, %v2981_v4  ;;  %v3182_v3 = vmax.f32 %v2978_v13, %v2982_v25  ;;  %v6433_v15 = vmax.f32 %v5648_v11, %v5626_v17 }
 0x25c   : > { %v3106_v38 = vmax.f32 %v1760_v58, %v4143_v23  ;;  %v3107_v51 = vmax.f32 %v1762_v55, %v4144_v62  ;;  %v3244_v54 = vmax.f32 %v3104_v60, %v3108_v53  ;;  %v3245_v6 = vmax.f32 %v3105_v7, %v3109_v12  ;;  %v6447_v53 = vld [vmem:[#allocation46_spill] sm:$0xff]  ;;  %v6450_v58 = vld [vmem:[#allocation37_spill] sm:$0xff]  ;;  %v6454_v62 = vld [vmem:[#allocation23_spill] sm:$0xff] }
 0x25d   : > { %v3276_v63 = vmax.f32 %v6433_v15, %v3180_v14  ;;  %v3183_v8 = vmax.f32 %v2979_v57, %v2983_v42  ;;  %v6434_v9 = vmax.f32 %v5653_v36, %v5632_v52  ;;  %v6437_v45 = vmax.f32 %v6435_v34, %v6436_v26  ;;  %v6444_v42 = vld [vmem:[#allocation44_spill] sm:$0xff] }
 0x25e   : > { %v3246_v4 = vmax.f32 %v3106_v38, %v3110_v32  ;;  %v3247_v25 = vmax.f32 %v3107_v51, %v3111_v56  ;;  %v6440_v11 = vmax.f32 %v6438_v24, %v6439_v50  ;;  %v6443_v33 = vmax.f32 %v6441_v0, %v6442_v16  ;;  %v6453_v14 = vld [vmem:[#allocation12_spill] sm:$0xff] }
 0x25f   : > { %v3277_v40 = vmax.f32 %v6434_v9, %v3181_v5  ;;  %v3278_v1 = vmax.f32 %v6437_v45, %v3182_v3  ;;  %v3340_v19 = vmax.f32 %v3276_v63, 0.0  ;;  %v6446_v59 = vmax.f32 %v6444_v42, %v6445_v37 }
 0x260   : > { %v3308_v17 = vmax.f32 %v6440_v11, %v3244_v54  ;;  %v3309_v48 = vmax.f32 %v6443_v33, %v3245_v6  ;;  %v6449_v28 = vmax.f32 %v6447_v53, %v6448_v21  ;;  %v6452_v12 = vmax.f32 %v6450_v58, %v6451_v44 }
 0x261   : > { %v3279_v36 = vmax.f32 %v6446_v59, %v3183_v8  ;;  %v3341_v52 = vmax.f32 %v3277_v40, 0.0  ;;  %v3342_v29 = vmax.f32 %v3278_v1, 0.0  ;;  %v3531_v31 = vrot.slane %v3340_v19, %v4929_v39  ;;  %v6455_v8 = vld [vmem:[#allocation14_spill] sm:$0xff] }
 0x262   : > { %v3310_v22 = vmax.f32 %v6449_v28, %v3246_v4  ;;  %v3311_v32 = vmax.f32 %v6452_v12, %v3247_v25  ;;  %v3372_v10 = vmax.f32 %v3308_v17, 0.0  ;;  %v3373_v47 = vmax.f32 %v3309_v48, 0.0 }
 0x263   : > { %v3343_v2 = vmax.f32 %v3279_v36, 0.0  ;;  %v3535_v43 = vrot.slane %v3341_v52, %v4929_v39  ;;  %v3539_v61 = vrot.slane %v3342_v29, %v4929_v39  ;;  %v3728_v56 = vsel %vm3710_vm3, %v3531_v31, %v5883_v41 }
 0x264   : > { %v3374_v55 = vmax.f32 %v3310_v22, 0.0  ;;  %v3375_v18 = vmax.f32 %v3311_v32, 0.0  ;;  %v3659_v20 = vrot.slane %v3372_v10, %v4929_v39  ;;  %v3663_v46 = vrot.slane %v3373_v47, %v4929_v39  ;;  %v6456_v22 = vld [vmem:[#allocation24_spill] sm:$0xff]  ;;  %v6457_v10 = vld [vmem:[#allocation11_spill] sm:$0xff] }
 0x265   : > { %v3543_v49 = vrot.slane %v3343_v2, %v4929_v39  ;;  %v3729_v13 = vsel %vm3712_vm4, %v3535_v43, %v3728_v56  ;;  %v523_v23 = vadd.f32 %v5874_v35, %v6453_v14  ;;  %v683_v60 = vadd.f32 %v5874_v35, %v6454_v62 }
 0x266   : > { %v3730_v7 = vsel %vm3714_vm5, %v3539_v61, %v3729_v13  ;;  %v3667_v41 = vrot.slane %v3374_v55, %v4929_v39  ;;  %v3671_v57 = vrot.slane %v3375_v18, %v4929_v39  ;;  %v3756_v5 = vsel %vm3710_vm3, %v3659_v20, %v5891_v27 }
 0x267   : > { %v3731_v3 = vsel %vm3716_vm6, %v3543_v49, %v3730_v7  ;;  %v3757_v15 = vsel %vm3712_vm4, %v3663_v46, %v3756_v5  ;;  %v1253_v63 = vcombine.high %v523_v23, %v523_v23  ;;  %v1260_v38 = vrot.slane %v523_v23, %v4923_v30  ;;  %v6458_v5 = vld [vmem:[#allocation38_spill] sm:$0xff] }
 0x268   : > { %3777 = vst [vmem:[%s5414_s10 + $0x10] sm:$0xff] %v3731_v3  ;;  %v3758_v51 = vsel %vm3714_vm5, %v3667_v41, %v3757_v15  ;;  %v1797_v54 = vcombine.high %v683_v60, %v683_v60  ;;  %v1804_v6 = vrot.slane %v683_v60, %v4923_v30  ;;  %v518_v9 = vadd.f32 %v5874_v35, %v6455_v8  ;;  %v6459_v3 = vld [vmem:[#allocation45_spill] sm:$0xff] }
 0x269   : > { %v3759_v40 = vsel %vm3716_vm6, %v3671_v57, %v3758_v51  ;;  %v1267_v27 = vrot.slane %v1253_v63, %v4923_v30  ;;  %v1268_v34 = vcombine.high %v1260_v38, %v1260_v38  ;;  %v4025_v26 = vrot.slane %v1260_v38, 9  ;;  %v6462_v8 = vld [vmem:[#allocation49_spill] sm:$0xff] }
 0x26a   : > { %3781 = vst [vmem:[%s5414_s10 + $0x30] sm:$0xff] %v3759_v40  ;;  %v1811_v45 = vrot.slane %v1797_v54, %v4923_v30  ;;  %v1812_v1 = vcombine.high %v1804_v6, %v1804_v6  ;;  %v4153_v19 = vrot.slane %v1804_v6, 9  ;;  %v1236_v4 = vcombine.high %v518_v9, %v518_v9 }
 0x26b   : > { %v1269_v25 = vcombine.high %v1267_v27, %v1267_v27  ;;  %v4026_v24 = vrot.slane %v1268_v34, 9  ;;  %v4027_v50 = vrot.slane %v1267_v27, 9  ;;  %v2988_v11 = vmax.f32 %v1260_v38, %v4025_v26  ;;  %v6464_v26 = vld [vmem:[#allocation52_spill] sm:$0xff] }
 0x26c   : > { %v1813_v17 = vcombine.high %v1811_v45, %v1811_v45  ;;  %v4154_v0 = vrot.slane %v1812_v1, 9  ;;  %v4155_v16 = vrot.slane %v1811_v45, 9  ;;  %v3116_v33 = vmax.f32 %v1804_v6, %v4153_v19  ;;  %v6461_v6 = vld [vmem:[#allocation55_spill] sm:$0xff] }
 0x26d   : > { %v4028_v48 = vrot.slane %v1269_v25, 9  ;;  %v2989_v42 = vmax.f32 %v1268_v34, %v4026_v24  ;;  %v2990_v37 = vmax.f32 %v1267_v27, %v4027_v50  ;;  %v1243_v59 = vrot.slane %v518_v9, %v4923_v30  ;;  %v6467_v50 = vld [vmem:[#allocation43_spill] sm:$0xff] }
 0x26e   : > { %v4156_v36 = vrot.slane %v1813_v17, 9  ;;  %v3117_v52 = vmax.f32 %v1812_v1, %v4154_v0  ;;  %v3118_v29 = vmax.f32 %v1811_v45, %v4155_v16  ;;  %v1250_v31 = vrot.slane %v1236_v4, %v4923_v30  ;;  %v6465_v45 = vld [vmem:[#allocation36_spill] sm:$0xff] }
 0x26f   : > { %v2991_v53 = vmax.f32 %v1269_v25, %v4028_v48  ;;  %v1251_v21 = vcombine.high %v1243_v59, %v1243_v59  ;;  %v4021_v28 = vrot.slane %v1243_v59, 9  ;;  %v678_v58 = vadd.f32 %v5874_v35, %v6456_v22  ;;  %v6470_v22 = vld [vmem:[#allocation21_spill] sm:$0xff] }
 0x270   : > { %v3119_v44 = vmax.f32 %v1813_v17, %v4156_v36  ;;  %v1252_v12 = vcombine.high %v1250_v31, %v1250_v31  ;;  %v4023_v32 = vrot.slane %v1250_v31, 9  ;;  %v533_v47 = vadd.f32 %v5874_v35, %v6457_v10 }
 0x271   : > { %v4022_v2 = vrot.slane %v1251_v21, 9  ;;  %v2984_v43 = vmax.f32 %v1243_v59, %v4021_v28  ;;  %v1780_v61 = vcombine.high %v678_v58, %v678_v58  ;;  %v1787_v56 = vrot.slane %v678_v58, %v4923_v30  ;;  %v6471_v58 = vld [vmem:[#allocation39_spill] sm:$0xff] }
 0x272   : > { %v4024_v55 = vrot.slane %v1252_v12, 9  ;;  %v2986_v18 = vmax.f32 %v1250_v31, %v4023_v32  ;;  %v1287_v20 = vcombine.high %v533_v47, %v533_v47  ;;  %v1294_v46 = vrot.slane %v533_v47, %v4923_v30 }
 0x273   : > { %v2985_v49 = vmax.f32 %v1251_v21, %v4022_v2  ;;  %v3184_v13 = vmax.f32 %v2984_v43, %v2988_v11  ;;  %v1794_v14 = vrot.slane %v1780_v61, %v4923_v30  ;;  %v1795_v23 = vcombine.high %v1787_v56, %v1787_v56  ;;  %v6468_v11 = vld [vmem:[#allocation51_spill] sm:$0xff]  ;;  %v6473_v2 = vld [vmem:[#allocation26_spill] sm:$0xff] }
 0x274   : > { %v2987_v62 = vmax.f32 %v1252_v12, %v4024_v55  ;;  %v3186_v60 = vmax.f32 %v2986_v18, %v2990_v37  ;;  %v4149_v7 = vrot.slane %v1787_v56, 9  ;;  %v1301_v41 = vrot.slane %v1287_v20, %v4923_v30  ;;  %v6474_v43 = vld [vmem:[#allocation42_spill] sm:$0xff]  ;;  %v6477_v18 = vld [vmem:[#allocation48_spill] sm:$0xff] }
 0x275   : > { %v3185_v57 = vmax.f32 %v2985_v49, %v2989_v42  ;;  %v6460_v15 = vmax.f32 %v6458_v5, %v6459_v3  ;;  %v1796_v38 = vcombine.high %v1794_v14, %v1794_v14  ;;  %v4150_v51 = vrot.slane %v1795_v23, 9  ;;  %v6476_v55 = vld [vmem:[#allocation22_spill] sm:$0xff] }
 0x276   : > { %v3187_v54 = vmax.f32 %v2987_v62, %v2991_v53  ;;  %v6463_v9 = vmax.f32 %v6461_v6, %v6462_v8  ;;  %v4151_v27 = vrot.slane %v1794_v14, 9  ;;  %v3112_v34 = vmax.f32 %v1787_v56, %v4149_v7 }
 0x277   : > { %v3280_v63 = vmax.f32 %v6460_v15, %v3184_v13  ;;  %v6466_v1 = vmax.f32 %v6464_v26, %v6465_v45  ;;  %v4152_v25 = vrot.slane %v1796_v38, 9  ;;  %v3113_v24 = vmax.f32 %v1795_v23, %v4150_v51  ;;  %v6480_v23 = vld [vmem:[#allocation40_spill] sm:$0xff] }
 0x278   : > { %v3282_v40 = vmax.f32 %v6463_v9, %v3186_v60  ;;  %v6469_v17 = vmax.f32 %v6467_v50, %v6468_v11  ;;  %v3114_v48 = vmax.f32 %v1794_v14, %v4151_v27  ;;  %v3248_v42 = vmax.f32 %v3112_v34, %v3116_v33  ;;  %v6479_v14 = vld [vmem:[#allocation63_spill] sm:$0xff] }
 0x279   : > { %v3281_v19 = vmax.f32 %v6466_v1, %v3185_v57  ;;  %v3344_v4 = vmax.f32 %v3280_v63, 0.0  ;;  %v3115_v36 = vmax.f32 %v1796_v38, %v4152_v25  ;;  %v3249_v31 = vmax.f32 %v3113_v24, %v3117_v52  ;;  %v6482_v9 = vld [vmem:[#allocation31_spill] sm:$0xff] }
 0x27a   : > { %v3283_v0 = vmax.f32 %v6469_v17, %v3187_v54  ;;  %v3346_v16 = vmax.f32 %v3282_v40, 0.0  ;;  %v3250_v28 = vmax.f32 %v3114_v48, %v3118_v29  ;;  %v6472_v12 = vmax.f32 %v6470_v22, %v6471_v58  ;;  %v6483_v25 = vld [vmem:[#allocation15_spill] sm:$0xff]  ;;  %v6484_v17 = vld [vmem:[#allocation28_spill] sm:$0xff] }
 0x27b   : > { %v3345_v37 = vmax.f32 %v3281_v19, 0.0  ;;  %v3547_v59 = vrot.slane %v3344_v4, %v4929_v39  ;;  %v3251_v47 = vmax.f32 %v3115_v36, %v3119_v44  ;;  %v6475_v61 = vmax.f32 %v6473_v2, %v6474_v43 }
 0x27c   : > { %v3347_v53 = vmax.f32 %v3283_v0, 0.0  ;;  %v3555_v21 = vrot.slane %v3346_v16, %v4929_v39  ;;  %v3312_v32 = vmax.f32 %v6472_v12, %v3248_v42  ;;  %v1302_v56 = vcombine.high %v1294_v46, %v1294_v46 }
 0x27d   : > { %v3551_v10 = vrot.slane %v3345_v37, %v4929_v39  ;;  %v3313_v33 = vmax.f32 %v6475_v61, %v3249_v31  ;;  %v6478_v20 = vmax.f32 %v6476_v55, %v6477_v18  ;;  %v1303_v13 = vcombine.high %v1301_v41, %v1301_v41 }
 0x27e   : > { %v3376_v49 = vmax.f32 %v3312_v32, 0.0  ;;  %v6481_v62 = vmax.f32 %v6479_v14, %v6480_v23  ;;  %v4033_v57 = vrot.slane %v1294_v46, 9  ;;  %v3559_v44 = vrot.slane %v3347_v53, %v4929_v39 }
 0x27f   : > { %v3314_v52 = vmax.f32 %v6478_v20, %v3250_v28  ;;  %v3732_v29 = vsel %vm3704_vm0, %v3551_v10, %v3547_v59  ;;  %v3377_v7 = vmax.f32 %v3313_v33, 0.0  ;;  %v4034_v15 = vrot.slane %v1302_v56, 9 }
 0x280   : > { %v3315_v60 = vmax.f32 %v6481_v62, %v3251_v47  ;;  %v3733_v5 = vsel %vm3706_vm1, %v3555_v21, %v3732_v29  ;;  %v3675_v38 = vrot.slane %v3376_v49, %v4929_v39  ;;  %v4035_v54 = vrot.slane %v1301_v41, 9 }
 0x281   : > { %v3378_v3 = vmax.f32 %v3314_v52, 0.0  ;;  %v3679_v51 = vrot.slane %v3377_v7, %v4929_v39  ;;  %v4036_v8 = vrot.slane %v1303_v13, 9  ;;  %v693_v40 = vadd.f32 %v5874_v35, %v6482_v9 }
 0x282   : > { %v3379_v63 = vmax.f32 %v3315_v60, 0.0  ;;  %v2996_v26 = vmax.f32 %v1294_v46, %v4033_v57  ;;  %v2997_v45 = vmax.f32 %v1302_v56, %v4034_v15  ;;  %v528_v24 = vadd.f32 %v5874_v35, %v6483_v25  ;;  %v6486_v15 = vld [vmem:[#allocation25_spill] sm:$0xff] }
 0x283   : > { %v3683_v6 = vrot.slane %v3378_v3, %v4929_v39  ;;  %v3760_v34 = vsel %vm3704_vm0, %v3679_v51, %v3675_v38  ;;  %v1831_v19 = vcombine.high %v693_v40, %v693_v40  ;;  %v1838_v4 = vrot.slane %v693_v40, %v4923_v30  ;;  %v6485_v3 = vld [vmem:[#allocation61_spill] sm:$0xff]  ;;  %v6488_v40 = vld [vmem:[#allocation60_spill] sm:$0xff] }
 0x284   : > { %v3687_v27 = vrot.slane %v3379_v63, %v4929_v39  ;;  %v2998_v50 = vmax.f32 %v1301_v41, %v4035_v54  ;;  %v6001_v11 = vsel %vm3708_vm2, %v3559_v44, %v3733_v5  ;;  %v688_v0 = vadd.f32 %v5874_v35, %v6484_v17  ;;  %v6494_v17 = vld [vmem:[#allocation67_spill] sm:$0xff] }
 0x285   : > { %v3761_v1 = vsel %vm3706_vm1, %v3683_v6, %v3760_v34  ;;  %v1845_v46 = vrot.slane %v1831_v19, %v4923_v30  ;;  %v1846_v48 = vcombine.high %v1838_v4, %v1838_v4  ;;  %v4161_v42 = vrot.slane %v1838_v4, 9  ;;  %v6492_v19 = vld [vmem:[#allocation53_spill] sm:$0xff] }
 0x286   : > { %v6006_v16 = vsel %vm3708_vm2, %v3687_v27, %v3761_v1  ;;  %v1270_v37 = vcombine.high %v528_v24, %v528_v24  ;;  %v2999_v59 = vmax.f32 %v1303_v13, %v4036_v8  ;;  %v1277_v36 = vrot.slane %v528_v24, %v4923_v30  ;;  %v6489_v27 = vld [vmem:[#allocation56_spill] sm:$0xff]  ;;  %v6491_v1 = vld [vmem:[#allocation70_spill] sm:$0xff] }
 0x287   : > { %v1814_v31 = vcombine.high %v688_v0, %v688_v0  ;;  %v1821_v41 = vrot.slane %v688_v0, %v4923_v30  ;;  %v1847_v53 = vcombine.high %v1845_v46, %v1845_v46  ;;  %v4162_v21 = vrot.slane %v1846_v48, 9  ;;  %v6495_v0 = vld [vmem:[#allocation59_spill] sm:$0xff] }
 0x288   : > { %v4163_v28 = vrot.slane %v1845_v46, 9  ;;  %v3124_v22 = vmax.f32 %v1838_v4, %v4161_v42  ;;  %v1284_v35 = vrot.slane %v1270_v37, %v4923_v30  ;;  %v1285_v58 = vcombine.high %v1277_v36, %v1277_v36  ;;  %v6497_v42 = vld [vmem:[#allocation64_spill] sm:$0xff]  ;;  %v6498_v37 = vld [vmem:[#allocation65_spill] sm:$0xff] }
 0x289   : > { %v4029_v12 = vrot.slane %v1277_v36, 9  ;;  %v1828_v32 = vrot.slane %v1814_v31, %v4923_v30  ;;  %v4164_v10 = vrot.slane %v1847_v53, 9  ;;  %v3125_v47 = vmax.f32 %v1846_v48, %v4162_v21 }
 0x28a   : > { %v3126_v2 = vmax.f32 %v1845_v46, %v4163_v28  ;;  %v1829_v43 = vcombine.high %v1821_v41, %v1821_v41  ;;  %v1286_v61 = vcombine.high %v1284_v35, %v1284_v35  ;;  %v4030_v33 = vrot.slane %v1285_v58, 9 }
 0x28b   : > { %v4031_v56 = vrot.slane %v1284_v35, 9  ;;  %v2992_v55 = vmax.f32 %v1277_v36, %v4029_v12  ;;  %v3127_v18 = vmax.f32 %v1847_v53, %v4164_v10  ;;  %v1830_v20 = vcombine.high %v1828_v32, %v1828_v32  ;;  %v6504_v12 = vld [vmem:[#allocation57_spill] sm:$0xff] }
 0x28c   : > { %v4157_v52 = vrot.slane %v1821_v41, 9  ;;  %v4158_v49 = vrot.slane %v1829_v43, 9  ;;  %v4032_v13 = vrot.slane %v1286_v61, 9  ;;  %v2993_v29 = vmax.f32 %v1285_v58, %v4030_v33  ;;  %v6503_v58 = vld [vmem:[#allocation29_spill] sm:$0xff] }
 0x28d   : > { %v2994_v14 = vmax.f32 %v1284_v35, %v4031_v56  ;;  %v3188_v23 = vmax.f32 %v2992_v55, %v2996_v26  ;;  %v4159_v62 = vrot.slane %v1828_v32, 9  ;;  %v4160_v60 = vrot.slane %v1830_v20, 9 }
 0x28e   : > { %v3120_v7 = vmax.f32 %v1821_v41, %v4157_v52  ;;  %v3121_v30 = vmax.f32 %v1829_v43, %v4158_v49  ;;  %v2995_v57 = vmax.f32 %v1286_v61, %v4032_v13  ;;  %v3189_v44 = vmax.f32 %v2993_v29, %v2997_v45  ;;  %v6501_v41 = vld [vmem:[#allocation66_spill] sm:$0xff] }
 0x28f   : > { %v3190_v5 = vmax.f32 %v2994_v14, %v2998_v50  ;;  %v6487_v63 = vmax.f32 %v6485_v3, %v6486_v15  ;;  %v3122_v51 = vmax.f32 %v1828_v32, %v4159_v62  ;;  %v3123_v54 = vmax.f32 %v1830_v20, %v4160_v60 }
 0x290   : > { %v3252_v6 = vmax.f32 %v3120_v7, %v3124_v22  ;;  %v3253_v8 = vmax.f32 %v3121_v30, %v3125_v47  ;;  %v3191_v9 = vmax.f32 %v2995_v57, %v2999_v59  ;;  %v6490_v34 = vmax.f32 %v6488_v40, %v6489_v27  ;;  %v6500_v59 = vld [vmem:[#allocation30_spill] sm:$0xff]  ;;  %v6506_v47 = vld [vmem:[#allocation32_spill] sm:$0xff] }
 0x291   : > { %v3284_v38 = vmax.f32 %v6487_v63, %v3188_v23  ;;  %v6493_v4 = vmax.f32 %v6491_v1, %v6492_v19  ;;  %v3254_v45 = vmax.f32 %v3122_v51, %v3126_v2  ;;  %v3255_v50 = vmax.f32 %v3123_v54, %v3127_v18  ;;  %v6507_v2 = vld [vmem:[#allocation68_spill] sm:$0xff] }
 0x292   : > { %v3285_v26 = vmax.f32 %v6490_v34, %v3189_v44  ;;  %v6496_v46 = vmax.f32 %v6494_v17, %v6495_v0  ;;  %v6499_v36 = vmax.f32 %v6497_v42, %v6498_v37  ;;  %v6502_v53 = vmax.f32 %v6500_v59, %v6501_v41 }
 0x293   : > { %v3286_v25 = vmax.f32 %v6493_v4, %v3190_v5  ;;  %v3348_v24 = vmax.f32 %v3284_v38, 0.0  ;;  %v6505_v32 = vmax.f32 %v6503_v58, %v6504_v12  ;;  %v6508_v43 = vmax.f32 %v6506_v47, %v6507_v2 }
 0x294   : > { %v3316_v48 = vmax.f32 %v6496_v46, %v3252_v6  ;;  %v3317_v31 = vmax.f32 %v6499_v36, %v3253_v8  ;;  %v3287_v21 = vmax.f32 %v6502_v53, %v3191_v9  ;;  %v3349_v28 = vmax.f32 %v3285_v26, 0.0 }
 0x295   : > { %v3350_v22 = vmax.f32 %v3286_v25, 0.0  ;;  %v3563_v35 = vrot.slane %v3348_v24, %v4929_v39  ;;  %v3318_v10 = vmax.f32 %v6505_v32, %v3254_v45  ;;  %v3319_v61 = vmax.f32 %v6508_v43, %v3255_v50 }
 0x296   : > { %v3380_v33 = vmax.f32 %v3316_v48, 0.0  ;;  %v3381_v56 = vmax.f32 %v3317_v31, 0.0  ;;  %v3351_v55 = vmax.f32 %v3287_v21, 0.0  ;;  %v3567_v18 = vrot.slane %v3349_v28, %v4929_v39 }
 0x297   : > { %v3571_v20 = vrot.slane %v3350_v22, %v4929_v39  ;;  %v3735_v52 = vsel %vm3710_vm3, %v3563_v35, %v6001_v11  ;;  %v3382_v49 = vmax.f32 %v3318_v10, 0.0  ;;  %v3383_v13 = vmax.f32 %v3319_v61, 0.0 }
 0x298   : > { %v3691_v29 = vrot.slane %v3380_v33, %v4929_v39  ;;  %v3695_v14 = vrot.slane %v3381_v56, %v4929_v39  ;;  %v3575_v23 = vrot.slane %v3351_v55, %v4929_v39  ;;  %v3736_v62 = vsel %vm3712_vm4, %v3567_v18, %v3735_v52 }
 0x299   : > { %v3737_v60 = vsel %vm3714_vm5, %v3571_v20, %v3736_v62  ;;  %v3699_v11 = vrot.slane %v3382_v49, %v4929_v39  ;;  %v3703_v7 = vrot.slane %v3383_v13, %v4929_v39 }
 0x29a   : > { %v3763_v30 = vsel %vm3710_vm3, %v3691_v29, %v6006_v16  ;;  %v3738_v57 = vsel %vm3716_vm6, %v3575_v23, %v3737_v60 }
 0x29b   : > { %v3764_v44 = vsel %vm3712_vm4, %v3695_v14, %v3763_v30  ;;  %3778 = vst [vmem:[%s5414_s10 + $0x18] sm:$0xff] %v3738_v57 }
 0x29c   : > { %v3765_v39 = vsel %vm3714_vm5, %v3699_v11, %v3764_v44 }
 0x29d   : > { %v3766_v5 = vsel %vm3716_vm6, %v3703_v7, %v3765_v39 }
 0x29e   : > { %3782 = vst [vmem:[%s5414_s10 + $0x38] sm:$0xff] %v3766_v5 }
 0x29f   : > { %4579 = shalt.err (!%p4576_p5)
}
 0x2a0   : > { %s4580_s22 = scalar_lea.hbm %s6058_s4, 1024  ;;  %s4584_s11 = scalar_lea.hbm %s6116_s3, 2048 }
 0x2a1   : > { %p4581_p9 = scmp.ne.s32.totalorder %s6058_s4, %s4580_s22  ;;  %p4585_p3 = scmp.lt.u32.totalorder %s6058_s4, %s6116_s3 }
 0x2a2   : > { %p4586_p7 = scmp.lt.u32.totalorder %s4584_s11, %s4580_s22  ;;  %p4588_p4 = scmp.lt.u32.totalorder %s4580_s22, %s6058_s4 }
 0x2a3   : > { %p4582_p1 = pnand %p4581_p9, %p4781_p10 }
 0x2a4   : > { %p4587_p13 = por %p4586_p7, %p4585_p3 }
 0x2a5   : > { %p4583_p2 = pneg %p4582_p1 }
 0x2a6   : > { %p4589_p6 = por %p4588_p4, %p4587_p13 }
 0x2a8   : > { %p4590_p8 = pnand %p4589_p6, %p4583_p2 }
 0x2aa   : > { %4593 = shalt.err (!%p4590_p8)
}
 0x2ab   : > { %s4660_s19 = smov 128   ;;  %s4661_s25 = smov 8  }
 0x2ac   : > { %4434 = dma.vmem_to_hbm [thread:$0]  (%p4781_p10), %s6060_s26, 1024, %s6058_s4, %s3784_s6, %s4660_s19, %s4660_s19, %s4661_s25  }
 0x2ad PF: > { %s3814_s15 = sand.u32 1, %s4632_s12   ;;  %p6509_p12 = scmp.ne.s32.totalorder %s6209_s23, 0 }
 0x2ae   : > { %p6510_p11 = scmp.ge.s32.totalorder %s4652_s17, 2  ;;  %s3815_s21 = scalar_lea.sflag [#allocation4], %s3814_s15 }
 0x2b0   : > { %p4445_p0 = pnand %p6510_p11, %p6509_p12 }
 0x2b2   : > { %4627 = dma.done.wait (!%p4445_p0), %s3815_s21, 1024  }
 0x2b3   : > { %4629 = vsyncadd (!%p4445_p0), %s3815_s21, 4294966272  ;;  %s20_s17 = sadd.s32 1, %s4652_s17   ;;  %s6511_s12 = smov %s4636_s13 }
 0x2b4   : > { %p17_p5 = scmp.ge.s32.totalorder %s20_s17, 4   ;;  %s6512_s13 = smov %s4640_s14 }
 0x2b5   : > { %s6513_s14 = smov %s4790_s5  ;;  %s6514_s15 = smov %s4648_s16 }
 0x2b6   : > { %s6515_s16 = smov %s6517_s28  ;;  %19 = sbr.rel (!%p17_p5) target bundleno = 7 (0x7), region = 81 }
 0x2bd   :  { %3820 = vsyncpa [#allocation3], 1 }
 0x2be   :  { %3822 = vsyncpa [#allocation3 + $0x1], 1 }
 0x2bf   :  { %3823 = vsyncpa [#allocation6], 1 }
 0x2c0   :  { %3824 = vsyncpa [#allocation4], 1 }
 0x2c1   :  { %3826 = vsyncpa [#allocation4 + $0x1], 1 }

</bundles_post_ra>
